<compile_context>
chip_gen: v6e
topology: v6e:2x2x1
jax: 0.10.0
libtpu: 0.0.40
codegen_flags: <defaults>
</compile_context>

<pallas_src>
import functools

import jax
import jax.numpy as jnp
from jax.experimental import pallas as pl
from jax.experimental.pallas import tpu as pltpu

_MASK_VALUE = -1e30                    # large finite negative: avoids inf-inf NaNs
_VMEM_LIMIT = 32 * 1024 * 1024         # safe on v5e/v6e/v7x scoped-VMEM budgets


def _pick_tile(dim, candidates):
    """Largest candidate tile that evenly divides `dim`, else the full dim."""
    for c in candidates:
        if dim % c == 0:
            return c
    return dim


# --------------------------- tiled matmul (+ bias) -------------------------- #

def _matmul_kernel(*refs, has_bias):
    if has_bias:
        x_ref, w_ref, b_ref, o_ref, acc_ref = refs
    else:
        x_ref, w_ref, o_ref, acc_ref = refs
        b_ref = None

    @pl.when(pl.program_id(2) == 0)
    def _init():
        acc_ref[...] = jnp.zeros(acc_ref.shape, acc_ref.dtype)

    acc_ref[...] += jnp.dot(x_ref[...], w_ref[...],
                            preferred_element_type=jnp.float32)

    @pl.when(pl.program_id(2) == pl.num_programs(2) - 1)
    def _finalize():
        acc = acc_ref[...]
        if has_bias:
            acc = acc + b_ref[...].astype(jnp.float32)
        o_ref[...] = acc.astype(o_ref.dtype)


def matmul(x, w, b=None, *, out_dtype=None):
    """y = x @ w (+ b).   x: [M, K], w: [K, N], b: [1, N] or None."""
    M, K = x.shape
    K2, N = w.shape
    assert K == K2
    out_dtype = x.dtype if out_dtype is None else out_dtype

    tm = _pick_tile(M, (256, 128, 64, 32, 16, 8))
    tn = _pick_tile(N, (256, 128))
    tk = _pick_tile(K, (512, 256, 128))
    grid = (M // tm, N // tn, K // tk)

    in_specs = [
        pl.BlockSpec((tm, tk), lambda i, j, k: (i, k)),
        pl.BlockSpec((tk, tn), lambda i, j, k: (k, j)),
    ]
    args = [x, w]
    if b is not None:
        in_specs.append(pl.BlockSpec((1, tn), lambda i, j, k: (0, j)))
        args.append(b.reshape(1, N))

    return pl.pallas_call(
        functools.partial(_matmul_kernel, has_bias=b is not None),
        out_shape=jax.ShapeDtypeStruct((M, N), out_dtype),
        grid_spec=pltpu.PrefetchScalarGridSpec(
            num_scalar_prefetch=0,
            grid=grid,
            in_specs=in_specs,
            out_specs=pl.BlockSpec((tm, tn), lambda i, j, k: (i, j)),
            scratch_shapes=[pltpu.VMEM((tm, tn), jnp.float32)],
        ),
        compiler_params=pltpu.CompilerParams(
            dimension_semantics=("parallel", "parallel", "arbitrary"),
            vmem_limit_bytes=_VMEM_LIMIT),
    )(*args)


# ------------------------------- RoPE on K ---------------------------------- #

def _rope_k_kernel(k_ref, cos_ref, sin_ref, o_ref, *,
                   nkv, hd, rotary_dim, is_neox_style):
    half = rotary_dim // 2
    cos = cos_ref[...].astype(jnp.float32)
    sin = sin_ref[...].astype(jnp.float32)
    for h in range(nkv):
        c0 = h * hd
        x = k_ref[:, c0:c0 + hd]
        if is_neox_style:
            x1 = x[:, :half].astype(jnp.float32)
            x2 = x[:, half:rotary_dim].astype(jnp.float32)
            o_ref[:, c0:c0 + half] = (x1 * cos - x2 * sin).astype(o_ref.dtype)
            o_ref[:, c0 + half:c0 + rotary_dim] = (
                x2 * cos + x1 * sin).astype(o_ref.dtype)
        else:
            # TODO(synk): GPT-J interleaved rotary path implemented but not exercised.
            x1 = x[:, 0:rotary_dim:2].astype(jnp.float32)
            x2 = x[:, 1:rotary_dim:2].astype(jnp.float32)
            rot = jnp.stack([x1 * cos - x2 * sin, x2 * cos + x1 * sin],
                            axis=-1).reshape(x.shape[0], rotary_dim)
            o_ref[:, c0:c0 + rotary_dim] = rot.astype(o_ref.dtype)
        if rotary_dim < hd:
            o_ref[:, c0 + rotary_dim:c0 + hd] = x[:, rotary_dim:]


def rope_k(qkv, cos, sin, *, num_heads, num_kv_heads, head_dim,
           rotary_dim, is_neox_style):
    """RoPE applied to the K columns of the fused qkv activation -> [T, nkv*hd]."""
    T = qkv.shape[0]
    nkv, hd = num_kv_heads, head_dim
    kv_size = nkv * hd
    group = num_heads // num_kv_heads       # q_size = group * kv_size
    half = rotary_dim // 2
    tt = _pick_tile(T, (512, 256, 128, 64, 32, 16, 8))

    kernel = functools.partial(_rope_k_kernel, nkv=nkv, hd=hd,
                               rotary_dim=rotary_dim,
                               is_neox_style=is_neox_style)
    return pl.pallas_call(
        kernel,
        out_shape=jax.ShapeDtypeStruct((T, kv_size), qkv.dtype),
        grid_spec=pltpu.PrefetchScalarGridSpec(
            num_scalar_prefetch=0,
            grid=(T // tt,),
            in_specs=[
                # K columns of qkv start at column offset q_size = group * kv_size.
                pl.BlockSpec((tt, kv_size), lambda i: (i, group)),
                pl.BlockSpec((tt, half), lambda i: (i, 0)),
                pl.BlockSpec((tt, half), lambda i: (i, 0)),
            ],
            out_specs=pl.BlockSpec((tt, kv_size), lambda i: (i, 0)),
        ),
        compiler_params=pltpu.CompilerParams(
            dimension_semantics=("parallel",),
            vmem_limit_bytes=_VMEM_LIMIT),
    )(qkv, cos, sin)


# ---------------- flash causal GQA attention (RoPE-on-Q fused) --------------- #

def _flash_attn_kernel(q_ref, cos_ref, sin_ref, k_ref, v_ref, o_ref,
                       q_scr, m_scr, l_scr, acc_scr, *,
                       tq, tk, group, hd, rotary_dim, scale, is_neox_style):
    half = rotary_dim // 2
    qi = pl.program_id(1)
    ki = pl.program_id(2)

    @pl.when(ki == 0)
    def _init():
        # RoPE (+ softmax scale) on this kv-group's query tile, applied once per
        # (kv_head, q_tile) and kept resident in VMEM for the whole kv loop.
        cos = cos_ref[...].astype(jnp.float32)
        sin = sin_ref[...].astype(jnp.float32)
        for g in range(group):
            x = q_ref[:, g * hd:(g + 1) * hd]
            r0, r1 = g * tq, (g + 1) * tq
            if is_neox_style:
                x1 = x[:, :half].astype(jnp.float32)
                x2 = x[:, half:rotary_dim].astype(jnp.float32)
                q_scr[r0:r1, :half] = (
                    (x1 * cos - x2 * sin) * scale).astype(q_scr.dtype)
                q_scr[r0:r1, half:rotary_dim] = (
                    (x2 * cos + x1 * sin) * scale).astype(q_scr.dtype)
            else:
                # TODO(synk): GPT-J interleaved rotary path untested here.
                x1 = x[:, 0:rotary_dim:2].astype(jnp.float32)
                x2 = x[:, 1:rotary_dim:2].astype(jnp.float32)
                rot = jnp.stack([(x1 * cos - x2 * sin) * scale,
                                 (x2 * cos + x1 * sin) * scale],
                                axis=-1).reshape(tq, rotary_dim)
                q_scr[r0:r1, :rotary_dim] = rot.astype(q_scr.dtype)
            if rotary_dim < hd:
                q_scr[r0:r1, rotary_dim:] = (
                    x[:, rotary_dim:].astype(jnp.float32) * scale).astype(q_scr.dtype)
        m_scr[...] = jnp.full(m_scr.shape, _MASK_VALUE, m_scr.dtype)
        l_scr[...] = jnp.zeros(l_scr.shape, l_scr.dtype)
        acc_scr[...] = jnp.zeros(acc_scr.shape, acc_scr.dtype)

    q_start = qi * tq
    k_start = ki * tk

    @pl.when(k_start < q_start + tq)           # causal: skip fully-masked kv tiles
    def _compute():
        q = q_scr[...]                         # [group*tq, hd], roped + scaled
        k = k_ref[...]                         # [tk, hd]
        v = v_ref[...]                         # [tk, hd]
        s = jax.lax.dot_general(q, k, (((1,), (1,)), ((), ())),
                                preferred_element_type=jnp.float32)   # [group*tq, tk]
        rows = jax.lax.broadcasted_iota(jnp.int32, s.shape, 0)
        cols = jax.lax.broadcasted_iota(jnp.int32, s.shape, 1)
        q_pos = q_start + (rows % tq)
        k_pos = k_start + cols
        s = jnp.where(k_pos <= q_pos, s, _MASK_VALUE)

        m_prev = m_scr[...]
        m_new = jnp.maximum(m_prev, jnp.max(s, axis=-1, keepdims=True))
        alpha = jnp.exp(m_prev - m_new)
        p = jnp.exp(s - m_new)
        l_scr[...] = alpha * l_scr[...] + jnp.sum(p, axis=-1, keepdims=True)
        acc_scr[...] = alpha * acc_scr[...] + jax.lax.dot(
            p.astype(v.dtype), v, preferred_element_type=jnp.float32)
        m_scr[...] = m_new

    @pl.when(ki == pl.num_programs(2) - 1)
    def _finalize():
        out = acc_scr[...] * pl.reciprocal(l_scr[...], approx=True)
        for g in range(group):
            o_ref[:, g * hd:(g + 1) * hd] = (
                out[g * tq:(g + 1) * tq, :].astype(o_ref.dtype))


def flash_gqa_attention(qkv, k_rope, cos, sin, *, num_heads, num_kv_heads,
                        head_dim, rotary_dim, is_neox_style, scale, out_dtype):
    """Causal GQA flash attention reading Q/V straight from the fused qkv tensor.

    qkv:    [T, (nh + 2*nkv) * hd]  (q | k | v, q un-roped)
    k_rope: [T, nkv * hd]           (RoPE already applied)
    Returns [T, nh * hd] in the flat head-major layout expected by o_proj."""
    T = qkv.shape[0]
    nh, nkv, hd = num_heads, num_kv_heads, head_dim
    group = nh // nkv
    half = rotary_dim // 2
    tq = _pick_tile(T, (256, 128, 64, 32, 16, 8))
    tk = _pick_tile(T, (256, 128, 64, 32, 16, 8))
    grid = (nkv, T // tq, T // tk)

    kernel = functools.partial(
        _flash_attn_kernel, tq=tq, tk=tk, group=group, hd=hd,
        rotary_dim=rotary_dim, scale=scale, is_neox_style=is_neox_style)

    return pl.pallas_call(
        kernel,
        out_shape=jax.ShapeDtypeStruct((T, nh * hd), out_dtype),
        grid_spec=pltpu.PrefetchScalarGridSpec(
            num_scalar_prefetch=0,
            grid=grid,
            in_specs=[
                # q columns of qkv for this kv-head's query group (resident over ki)
                pl.BlockSpec((tq, group * hd), lambda kv, qi, ki: (qi, kv)),
                pl.BlockSpec((tq, half), lambda kv, qi, ki: (qi, 0)),     # cos
                pl.BlockSpec((tq, half), lambda kv, qi, ki: (qi, 0)),     # sin
                pl.BlockSpec((tk, hd), lambda kv, qi, ki: (ki, kv)),      # roped K
                # v columns of qkv for this kv head
                pl.BlockSpec((tk, hd), lambda kv, qi, ki: (ki, nh + nkv + kv)),
            ],
            out_specs=pl.BlockSpec((tq, group * hd), lambda kv, qi, ki: (qi, kv)),
            scratch_shapes=[
                pltpu.VMEM((group * tq, hd), qkv.dtype),     # roped + scaled q
                pltpu.VMEM((group * tq, 1), jnp.float32),    # running max
                pltpu.VMEM((group * tq, 1), jnp.float32),    # running sum
                pltpu.VMEM((group * tq, hd), jnp.float32),   # output accumulator
            ],
        ),
        compiler_params=pltpu.CompilerParams(
            dimension_semantics=("parallel", "parallel", "arbitrary"),
            vmem_limit_bytes=_VMEM_LIMIT),
    )(qkv, cos, sin, k_rope, qkv)


# ----------------------------- module wrapper -------------------------------- #

class Qwen2AttentionPatchPallas:
    """Pallas-TPU implementation of Qwen2AttentionPatch.forward (tp_size == 1)."""

    def __init__(self, hidden_size, num_heads, num_kv_heads, rope_theta=10000.0,
                 param_dtype=jnp.bfloat16, key=None):
        if key is None:
            key = jax.random.PRNGKey(0)
        self.hidden_size = hidden_size
        self.num_heads = num_heads
        self.num_kv_heads = num_kv_heads
        self.head_dim = hidden_size // num_heads
        self.q_size = self.num_heads * self.head_dim
        self.kv_size = self.num_kv_heads * self.head_dim
        self.scaling = self.head_dim ** -0.5
        self.rope_theta = rope_theta

        k1, k2, k3 = jax.random.split(key, 3)
        qkv_out = self.q_size + 2 * self.kv_size
        # deterministic synthetic parameters (no checkpoint load);
        # bf16 storage, f32 accumulation inside the kernels.
        self.w_qkv = (0.05 * jax.random.normal(
            k1, (hidden_size, qkv_out), jnp.float32)).astype(param_dtype)
        self.b_qkv = (0.05 * jax.random.normal(
            k2, (1, qkv_out), jnp.float32)).astype(param_dtype)
        self.w_o = (0.05 * jax.random.normal(
            k3, (self.q_size, hidden_size), jnp.float32)).astype(param_dtype)
        # o_proj has bias=False -> no bias tensor and the matmul skips the add.

    def forward(self, positions, hidden_states, kv_cache=None, attn_metadata=None):
        # TODO(synk): vLLM paged kv-cache update / decode lookup (kv_cache,
        # attn_metadata) is not implemented; treated as a plain causal prefill.
        (cos, sin, _cos_sin, _position, num_tokens, rotary_dim,
         head_size, is_neox_style) = positions
        assert head_size == self.head_dim
        assert hidden_states.shape[0] == num_tokens

        # fused qkv projection (tiled matmul + bias)
        qkv = matmul(hidden_states, self.w_qkv, self.b_qkv,
                     out_dtype=hidden_states.dtype)
        # RoPE on K (Q's RoPE is fused into the attention kernel prologue)
        k_roped = rope_k(qkv, cos, sin, num_heads=self.num_heads,
                         num_kv_heads=self.num_kv_heads, head_dim=self.head_dim,
                         rotary_dim=rotary_dim, is_neox_style=is_neox_style)
        # flash causal GQA attention
        attn = flash_gqa_attention(
            qkv, k_roped, cos, sin,
            num_heads=self.num_heads, num_kv_heads=self.num_kv_heads,
            head_dim=self.head_dim, rotary_dim=rotary_dim,
            is_neox_style=is_neox_style, scale=self.scaling,
            out_dtype=hidden_states.dtype)
        # output projection (no bias)
        return matmul(attn, self.w_o, None, out_dtype=hidden_states.dtype)


def make_positions(T, rotary_dim, head_dim, rope_theta, is_neox_style=True):
    pos = jnp.arange(T, dtype=jnp.float32)
    inv_freq = 1.0 / (rope_theta ** (jnp.arange(0, rotary_dim, 2, jnp.float32)
                                     / rotary_dim))
    freqs = pos[:, None] * inv_freq[None, :]                 # [T, rotary_dim/2]
    cos = jnp.cos(freqs)
    sin = jnp.sin(freqs)
    cos_sin = jnp.concatenate([cos, sin], axis=-1)
    return (cos, sin, cos_sin, pos.astype(jnp.int32), T, rotary_dim,
            head_dim, is_neox_style)


# -------------------------------- reference ---------------------------------- #

def reference_forward(mod, positions, hidden_states):
    cos, sin, _, _, T, rotary_dim, hd, is_neox = positions
    f32 = jnp.float32
    x = hidden_states.astype(f32)
    w_qkv, b_qkv, w_o = (mod.w_qkv.astype(f32), mod.b_qkv.astype(f32),
                         mod.w_o.astype(f32))
    qkv = x @ w_qkv + b_qkv
    q, k, v = jnp.split(qkv, [mod.q_size, mod.q_size + mod.kv_size], axis=-1)
    nh, nkv = mod.num_heads, mod.num_kv_heads
    c, s = cos.astype(f32)[:, None, :], sin.astype(f32)[:, None, :]

    def rope(t, n):
        t = t.reshape(T, n, hd)
        tr, tp = t[..., :rotary_dim], t[..., rotary_dim:]
        if is_neox:
            t1, t2 = jnp.split(tr, 2, axis=-1)
            rot = jnp.concatenate([t1 * c - t2 * s, t2 * c + t1 * s], -1)
        else:
            t1, t2 = tr[..., 0::2], tr[..., 1::2]
            rot = jnp.stack([t1 * c - t2 * s, t2 * c + t1 * s],
                            -1).reshape(T, n, rotary_dim)
        return jnp.concatenate([rot, tp], -1)

    qh, kh = rope(q, nh), rope(k, nkv)
    vh = v.reshape(T, nkv, hd)
    g = nh // nkv
    kh = jnp.repeat(kh, g, axis=1)
    vh = jnp.repeat(vh, g, axis=1)
    scores = jnp.einsum('qhd,khd->hqk', qh, kh) * mod.scaling
    mask = jnp.tril(jnp.ones((T, T), bool))
    scores = jnp.where(mask[None], scores, -jnp.inf)
    p = jax.nn.softmax(scores, axis=-1)
    o = jnp.einsum('hqk,khd->qhd', p, vh).reshape(T, mod.q_size)
    return o @ w_o


# ----------------------------------- main ------------------------------------ #

if __name__ == "__main__":
    hidden_size, num_heads, num_kv_heads = 512, 4, 2
    T = 512
    head_dim = hidden_size // num_heads            # 128
    rotary_dim = head_dim

    key = jax.random.PRNGKey(0)
    k_param, k_x = jax.random.split(key)
    mod = Qwen2AttentionPatchPallas(hidden_size, num_heads, num_kv_heads,
                                    rope_theta=10000.0, key=k_param)

    hidden_states = jax.random.normal(
        k_x, (T, hidden_size), jnp.float32).astype(jnp.bfloat16)
    positions = make_positions(T, rotary_dim, head_dim, mod.rope_theta,
                               is_neox_style=True)

    out = mod.forward(positions, hidden_states)
    out = jax.block_until_ready(out)
    assert out.shape == (T, hidden_size)
    assert out.dtype == hidden_states.dtype

    with jax.default_matmul_precision("highest"):
        ref = reference_forward(mod, positions, hidden_states)
    ref = jax.block_until_ready(ref)

    out32 = out.astype(jnp.float32)
    assert jnp.allclose(out32, ref, rtol=5e-2, atol=1e-1), (
        f"max abs err {jnp.max(jnp.abs(out32 - ref))}")

    print("KERNEL_OK")
</pallas_src>

<mosaic_0001>
module attributes {stable_mosaic.version = 11 : i64} {
  func.func @_matmul_kernel(%arg0: i32, %arg1: i32, %arg2: i32, %arg3: memref<256x512xbf16, #tpu.memory_space<vmem>>, %arg4: memref<512x256xbf16, #tpu.memory_space<vmem>>, %arg5: memref<1x256xbf16, #tpu.memory_space<vmem>>, %arg6: memref<256x256xbf16, #tpu.memory_space<vmem>>, %arg7: memref<256x256xf32, #tpu.memory_space<vmem>>) attributes {dimension_semantics = [#tpu.dimension_semantics<parallel>, #tpu.dimension_semantics<parallel>, #tpu.dimension_semantics<arbitrary>], iteration_bounds = array<i64: 2, 4, 1>, scalar_prefetch = 0 : i64, scratch_operands = 1 : i64, tpu.core_type = #tpu.core_type<tc>, window_params = [{transform_indices = @transform_0, window_bounds = array<i64: 256, 512>}, {transform_indices = @transform_1, window_bounds = array<i64: 512, 256>}, {transform_indices = @transform_2, window_bounds = array<i64: 1, 256>}, {transform_indices = @transform_3, window_bounds = array<i64: 256, 256>}]} {
    %c0_i32 = arith.constant 0 : i32
    %0 = arith.cmpi eq, %arg2, %c0_i32 : i32
    %1 = arith.extui %0 : i1 to i32
    %c0_i32_0 = arith.constant 0 : i32
    %2 = arith.cmpi ne, %1, %c0_i32_0 : i32
    scf.if %2 {
      %cst_10 = arith.constant 0.000000e+00 : f32
      %12 = vector.broadcast %cst_10 : f32 to vector<256x256xf32>
      %c0_11 = arith.constant 0 : index
      %c0_12 = arith.constant 0 : index
      %13 = vector.load %arg7[%c0_11, %c0_12] : memref<256x256xf32, #tpu.memory_space<vmem>>, vector<256x256xf32>
      tpu.vector_store %arg7[%c0_11, %c0_12], %12 {strides = array<i32>} : memref<256x256xf32, #tpu.memory_space<vmem>>, vector<256x256xf32>,
    } else {
    }
    %c0 = arith.constant 0 : index
    %c0_1 = arith.constant 0 : index
    %3 = vector.load %arg7[%c0, %c0_1] : memref<256x256xf32, #tpu.memory_space<vmem>>, vector<256x256xf32>
    %c0_2 = arith.constant 0 : index
    %c0_3 = arith.constant 0 : index
    %4 = vector.load %arg3[%c0_2, %c0_3] : memref<256x512xbf16, #tpu.memory_space<vmem>>, vector<256x512xbf16>
    %c0_4 = arith.constant 0 : index
    %c0_5 = arith.constant 0 : index
    %5 = vector.load %arg4[%c0_4, %c0_5] : memref<512x256xbf16, #tpu.memory_space<vmem>>, vector<512x256xbf16>
    %cst = arith.constant dense<0.000000e+00> : vector<256x256xf32>
    %6 = tpu.matmul %4, %5, %cst {dimension_numbers = #tpu.dot_dimension_numbers<[1], [0], [0], [1], [0, 0, 1, 1], [], []>} : vector<256x512xbf16>, vector<512x256xbf16>, vector<256x256xf32> -> vector<256x256xf32>
    %7 = arith.addf %3, %6 : vector<256x256xf32>
    %c0_6 = arith.constant 0 : index
    %c0_7 = arith.constant 0 : index
    %8 = vector.load %arg7[%c0_6, %c0_7] : memref<256x256xf32, #tpu.memory_space<vmem>>, vector<256x256xf32>
    tpu.vector_store %arg7[%c0_6, %c0_7], %7 {strides = array<i32>} : memref<256x256xf32, #tpu.memory_space<vmem>>, vector<256x256xf32>,
    %c0_i32_8 = arith.constant 0 : i32
    %9 = arith.cmpi eq, %arg2, %c0_i32_8 : i32
    %10 = arith.extui %9 : i1 to i32
    %c0_i32_9 = arith.constant 0 : i32
    %11 = arith.cmpi ne, %10, %c0_i32_9 : i32
    scf.if %11 {
      %c0_10 = arith.constant 0 : index
      %c0_11 = arith.constant 0 : index
      %12 = vector.load %arg7[%c0_10, %c0_11] : memref<256x256xf32, #tpu.memory_space<vmem>>, vector<256x256xf32>
      %c0_12 = arith.constant 0 : index
      %c0_13 = arith.constant 0 : index
      %13 = vector.load %arg5[%c0_12, %c0_13] : memref<1x256xbf16, #tpu.memory_space<vmem>>, vector<1x256xbf16>
      %14 = arith.extf %13 : vector<1x256xbf16> to vector<1x256xf32>
      %15 = vector.broadcast %14 : vector<1x256xf32> to vector<256x256xf32>
      %16 = arith.addf %12, %15 : vector<256x256xf32>
      %17 = arith.truncf %16 : vector<256x256xf32> to vector<256x256xbf16>
      %c0_14 = arith.constant 0 : index
      %c0_15 = arith.constant 0 : index
      %18 = vector.load %arg6[%c0_14, %c0_15] : memref<256x256xbf16, #tpu.memory_space<vmem>>, vector<256x256xbf16>
      tpu.vector_store %arg6[%c0_14, %c0_15], %17 {strides = array<i32>} : memref<256x256xbf16, #tpu.memory_space<vmem>>, vector<256x256xbf16>,
    } else {
    }
    return
  }
  func.func @transform_0(%arg0: i32, %arg1: i32, %arg2: i32) -> (i32, i32) {
    %c0_i32 = arith.constant 0 : i32
    return %arg0, %arg2 : i32, i32
  }
  func.func @transform_1(%arg0: i32, %arg1: i32, %arg2: i32) -> (i32, i32) {
    %c0_i32 = arith.constant 0 : i32
    return %arg2, %arg1 : i32, i32
  }
  func.func @transform_2(%arg0: i32, %arg1: i32, %arg2: i32) -> (i32, i32) {
    %c0_i32 = arith.constant 0 : i32
    %c0_i32_0 = arith.constant 0 : i32
    return %c0_i32, %arg1 : i32, i32
  }
  func.func @transform_3(%arg0: i32, %arg1: i32, %arg2: i32) -> (i32, i32) {
    %c0_i32 = arith.constant 0 : i32
    return %arg0, %arg1 : i32, i32
  }
}

</mosaic_0001>

<bundles_post_ra>
// kernel: tpu_custom_call.1
= control target key start
LH: loop header
LB: loop body
LE: loop exit
PB: predicated region body
PF: predicated region fallthrough
CT: control target
= control target key end

     0   :  { %s3629_s0 = inlined_call_operand.hbm [shape: bf16[512,512], index: 0, kind: input, shape index: {}]   ;;  %s3630_s1 = inlined_call_operand.hbm [shape: bf16[512,1024], index: 1, kind: input, shape index: {}]   ;;  %s3631_s2 = inlined_call_operand.hbm [shape: bf16[1,1024], index: 2, kind: input, shape index: {}]   ;;  %s3632_s3 = inlined_call_operand.hbm [shape: bf16[512,1024], index: 3, kind: output, shape index: {}]  }
   0x1   :  { %3643 = sst [smem:[#allocation25_spill]] %s3629_s0 }
   0x2   :  { %3644 = sst [smem:[#allocation26_spill]] %s3630_s1 }
   0x3   :  { %3645 = sst [smem:[#allocation27_spill]] %s3632_s3 }
   0x4   :  { %8 = vsyncpa [#allocation4], 0 }
   0x5   :  { %10 = vsyncpa [#allocation4 + $0x1], 0 }
   0x6   :  { %11 = vsyncpa [#allocation7], 0 }
   0x7   :  { %13 = vsyncpa [#allocation7 + $0x1], 0 }
   0x8   :  { %14 = vsyncpa [#allocation5], 0 }
   0x9   :  { %16 = vsyncpa [#allocation5 + $0x1], 0  ;;  %s3073_s12 = smov 0   ;;  %s3075_s13 = smov 0  }
   0xa   :  { %s3077_s14 = smov 0   ;;  %s3079_s15 = smov 0  }
   0xb   :  { %s3081_s16 = smov 0   ;;  %s3083_s17 = smov 0  }
   0xc   :  { %s3085_s18 = smov 0   ;;  %s3087_s19 = smov 0  }
   0xd   :  { %s3089_s20 = smov 0   ;;  %s3091_s21 = smov 0  }
   0xe   :  { %s3093_s22 = smov 0   ;;  %s3095_s23 = smov 0  }
   0xf   :  { %s3097_s24 = smov 0   ;;  %s3099_s25 = smov 0  }
  0x10 LB: > { %3646 = sst [smem:[#allocation13_spill]] %s2995_s14  ;;  %s37_s26 = sadd.s32 1, %s3031_s23  ;;  %s3039_s25 = sphi %s3099_s25, %s22_s25   ;;  %s3035_s24 = sphi %s3097_s24, %s3695_s24   ;;  %s3031_s23 = sphi %s3095_s23, %s3694_s23   ;;  %s3027_s22 = sphi %s3093_s22, %s3684_s22   ;;  %s3023_s21 = sphi %s3091_s21, %s3693_s21   ;;  %s3019_s20 = sphi %s3089_s20, %s3683_s20   ;;  %s3015_s19 = sphi %s3087_s19, %s3692_s19   ;;  %s3011_s18 = sphi %s3085_s18, %s3691_s18   ;;  %s3007_s17 = sphi %s3083_s17, %s3681_s17   ;;  %s3003_s16 = sphi %s3081_s16, %s3690_s16   ;;  %s2999_s15 = sphi %s3079_s15, %s3689_s15   ;;  %s2995_s14 = sphi %s3077_s14, %s3679_s14   ;;  %s2991_s13 = sphi %s3075_s13, %s3688_s13   ;;  %s2987_s12 = sphi %s3073_s12, %s3687_s12  }
  0x11   : > { %3647 = sst [smem:[#allocation14_spill]] %s3007_s17  ;;  %p58_p0 = scmp.eq.s32.totalorder %s3039_s25, 0 }
  0x12   : > { %3648 = sst [smem:[#allocation15_spill]] %s3019_s20  ;;  %p3147_p1 = scmp.ge.s32.totalorder %s37_s26, 4 }
  0x13   : > { %3649 = sst [smem:[#allocation16_spill]] %s3023_s21  ;;  %p85_p2 = scmp.ne.s32.totalorder %s3007_s17, %s3003_s16 }
  0x14   : > { %3650 = sst [smem:[#allocation17_spill]] %s3027_s22  ;;  %p91_p3 = scmp.ne.s32.totalorder %s3003_s16, %s2999_s15 }
  0x15   : > { %3651 = sst [smem:[#allocation18_spill]] %s3035_s24  ;;  %p2493_p4 = scmp.lt.s32.totalorder %s3039_s25, 8 }
  0x16   : > { %p87_p5 = por %p85_p2, %p58_p0  ;;  %s193_s29 = sand.u32 1, %s3039_s25  }
  0x17   : > { %s3633_s30 = sand.u32 1, %s3007_s17   ;;  %s2436_s5 = sshll.u32 %s3031_s23, 7 }
  0x18   : > { %s2256_s4 = sshll.u32 %s3633_s30, 9  ;;  %s3653_s1 = sld [smem:[#allocation26_spill]] }
  0x19   : > { %s197_s9 = scalar_lea.vmem [#allocation6], %s2256_s4  ;;  %p3169_p6 = pnand %p2493_p4, %p87_p5 }
  0x1a   : > { %s207_s10 = sshll.u32 %s197_s9, 4  ;;  %p2262_p7 = scmp.ge.s32.totalorder %s3039_s25, 1  ;;  %s208_s10 = int_to_ptr.vmem [resolvable:$true] %s207_s10 }
  0x1b   : > { %s3174_s28 = scalar_lea.sflag [#allocation7], %s193_s29  ;;  %p3637_p8 = pneg %p3169_p6 }
  0x1c   : > { %s2820_s30 = scalar_lea.vmem %s208_s10, 8192  ;;  %s3041_s4 = smov [#allocation6]  }
  0x1d   : > { %p2821_p9 = scmp.ne.s32.totalorder %s208_s10, %s2820_s30 }
  0x1e   : > { %s206_s8 = scalar_lea.hbm %s3653_s1, %s2436_s5  ;;  %s2825_s5 = sshll.u32 %s3041_s4, 4  ;;  %s2826_s5 = int_to_ptr.vmem [resolvable:$false] %s2825_s5 }
  0x1f   : > { %p2823_p10 = pnand %p2821_p9, %p3637_p8  ;;  %s2827_s6 = scalar_lea.vmem %s2826_s5, 16384 }
  0x20   : > { %p2828_p12 = scmp.lt.s32.totalorder %s208_s10, %s2826_s5  ;;  %p2829_p13 = scmp.lt.s32.totalorder %s2827_s6, %s2820_s30 }
  0x21   : > { %p2824_p11 = pneg %p2823_p10 }
  0x22   : > { %p2830_p2 = por %p2829_p13, %p2828_p12 }
  0x24   : > { %p2831_p5 = pnand %p2830_p2, %p2824_p11 }
  0x26   : > { %2834 = shalt.err (!%p2831_p5)
}
  0x27   : > { %s3042_s7 = smov 512   ;;  %s3043_s29 = smov 128  }
  0x28   : > { %s3044_s30 = smov 8   ;;  %p234_p9 = scmp.lt.s32.totalorder %s3039_s25, 9 }
  0x29   : > { %2485 = dma.hbm_to_vmem [thread:$0]  (!%p3169_p6), %s206_s8, 8192, %s208_s10, %s3174_s28, %s3042_s7, %s3043_s29, %s3044_s30  }
  0x2a   : > { %p3187_p10 = pnand %p2262_p7, %p234_p9  ;;  %s3192_s4 = sadd.s32 4294967295, %s3039_s25  }
  0x2b   : > { %s2249_s5 = sadd.s32 4294967294, %s3039_s25   ;;  %s3697_s26 = smov (%p3147_p1, %s37_s26), 0 }
  0x2c   : > { %3656 = sst [smem:[#allocation19_spill]] %s3697_s26  ;;  %s41_s6 = sadd.s32 1, %s3035_s24 }
  0x2d   : > { %s50_s8 = sadd.s32 1, %s3019_s20  ;;  %s3699_s6 = smov (!%p3147_p1, %s41_s6), %s3035_s24 }
  0x2e   : > { %p57_p7 = scmp.ne.s32.totalorder %s3019_s20, %s3015_s19  ;;  %p63_p11 = scmp.ne.s32.totalorder %s3015_s19, %s3011_s18 }
  0x2f   : > { %p43_p12 = scmp.ge.s32.totalorder %s3699_s6, 2  ;;  %p64_p13 = scmp.eq.s32.totalorder %s3192_s4, 0 }
  0x30   : > { %p3213_p2 = por %p58_p0, %p57_p7  ;;  %s74_s7 = ssub.s32 %s3031_s23, %s3697_s26 }
  0x31   : > { %s3701_s6 = smov (%p43_p12, %s3699_s6), 0  ;;  %p3221_p1 = por %p64_p13, %p63_p11 }
  0x32   : > { %3658 = sst [smem:[#allocation20_spill]] %s3701_s6  ;;  %p76_p5 = scmp.eq.s32.totalorder %s74_s7, 0 }
  0x33   : > { %s45_s18 = ssub.s32 %s3035_s24, %s3701_s6  ;;  %p3230_p9 = por %p91_p3, %p64_p13 }
  0x34   : > { %p48_p0 = scmp.eq.s32.totalorder %s45_s18, 0  ;;  %s129_s30 = sor.u32 %s74_s7, %s45_s18 }
  0x35   : > { %s3661_s1 = sadd.s32 1, %s3007_s17  ;;  %p130_p7 = scmp.eq.s32.totalorder %s129_s30, 0 }
  0x36   : > { %s3237_s26 = scalar_select %p76_p5, %s3007_s17, %s3661_s1  }
  0x37   : > { %s3240_s3 = scalar_select %p48_p0, %s3019_s20, %s50_s8  }
  0x38   : > { %3662 = sst [smem:[#allocation21_spill]] %s3237_s26  ;;  %s132_s22 = sadd.s32 1, %s2995_s14 }
  0x39   : > { %3663 = sst [smem:[#allocation22_spill]] %s3240_s3  ;;  %p142_p11 = scmp.ne.s32.totalorder %s2995_s14, %s2991_s13 }
  0x3a   : > { %p143_p12 = scmp.eq.s32.totalorder %s3192_s4, 7  ;;  %p148_p13 = scmp.ne.s32.totalorder %s2991_s13, %s2987_s12 }
  0x3b   : > { %s3247_s15 = scalar_select %p130_p7, %s2995_s14, %s132_s22  }
  0x3c   : > { %p3249_p3 = por %p143_p12, %p142_p11  ;;  %p149_p8 = scmp.eq.s32.totalorder %s2249_s5, 7 }
  0x3d   : > { %3664 = sst [smem:[#allocation23_spill]] %s3247_s15  ;;  %s169_s7 = sand.u32 1, %s3019_s20  }
  0x3e   : > { %s2252_s1 = sshll.u32 %s169_s7, 9  ;;  %p3256_p5 = por %p149_p8, %p148_p13 }
  0x3f   : > { %s2435_s18 = sshll.u32 %s3035_s24, 13  ;;  %s173_s30 = scalar_lea.vmem [#allocation3], %s2252_s1 }
  0x40   : > { %s3666_s8 = scalar_select %p3256_p5, 1, 0 }
  0x41   : > { %s183_s3 = sshll.u32 %s173_s30, 4  ;;  %s3668_s0 = sld [smem:[#allocation25_spill]]  ;;  %s184_s3 = int_to_ptr.vmem [resolvable:$true] %s183_s3 }
  0x42   : > { %3667 = sst [smem:[#allocation24_spill]] %s3666_s8  ;;  %p3268_p0 = pnand %p2493_p4, %p3213_p2 }
  0x43   : > { %s3670_s5 = sand.u32 1, %s3007_s17   ;;  %s170_s14 = scalar_lea.sflag [#allocation4], %s169_s7 }
  0x44   : > { %s2259_s20 = sshll.u32 %s3670_s5, 1  ;;  %p2837_p8 = pneg %p3268_p0 }
  0x45   : > { %s2848_s24 = scalar_lea.vmem %s184_s3, 8192  ;;  %s3045_s1 = smov [#allocation3]  }
  0x46   : > { %p2849_p7 = scmp.ne.s32.totalorder %s184_s3, %s2848_s24  ;;  %s2853_s21 = sshll.u32 %s3045_s1, 4  ;;  %s2854_s21 = int_to_ptr.vmem [resolvable:$false] %s2853_s21 }
  0x47   : > { %s182_s22 = scalar_lea.hbm %s3668_s0, %s2435_s18  ;;  %s2855_s26 = scalar_lea.vmem %s2854_s21, 16384 }
  0x48   : > { %p2851_p11 = pnand %p2849_p7, %p2837_p8  ;;  %p2856_p13 = scmp.lt.s32.totalorder %s184_s3, %s2854_s21 }
  0x49   : > { %p2857_p5 = scmp.lt.s32.totalorder %s2855_s26, %s2848_s24 }
  0x4a   : > { %p2852_p12 = pneg %p2851_p11 }
  0x4b   : > { %p2858_p4 = por %p2857_p5, %p2856_p13 }
  0x4d   : > { %p2859_p2 = pnand %p2858_p4, %p2852_p12 }
  0x4f   : > { %2862 = shalt.err (!%p2859_p2)
}
  0x50   : > { %s3046_s10 = smov 256   ;;  %s3047_s7 = smov 16  }
  0x51   : > { %2482 = dma.hbm_to_vmem [thread:$0]  (!%p3268_p0), %s182_s22, 8192, %s184_s3, %s170_s14, %s3046_s10, %s3046_s10, %s3047_s7  }
  0x52   : > { %s2437_s18 = sshll.u32 %s3031_s23, 5  ;;  %s221_s30 = scalar_lea.vmem [#allocation8], %s2259_s20 }
  0x53   : > { %s229_s5 = sshll.u32 %s221_s30, 4  ;;  %s227_s1 = scalar_lea.hbm %s3631_s2, %s2437_s18  ;;  %s230_s5 = int_to_ptr.vmem [resolvable:$true] %s229_s5 }
  0x54   : > { %s2876_s21 = scalar_lea.vmem %s230_s5, 32  ;;  %p3671_p5 = pneg %p3169_p6 }
  0x55   : > { %p2877_p8 = scmp.ne.s32.totalorder %s230_s5, %s2876_s21  ;;  %s3048_s24 = smov [#allocation8]  }
  0x56   : > { %s2881_s26 = sshll.u32 %s3048_s24, 4  ;;  %s2882_s26 = int_to_ptr.vmem [resolvable:$false] %s2881_s26 }
  0x57   : > { %p2879_p7 = pnand %p2877_p8, %p3671_p5  ;;  %s2883_s8 = scalar_lea.vmem %s2882_s26, 64 }
  0x58   : > { %p2884_p12 = scmp.lt.s32.totalorder %s230_s5, %s2882_s26  ;;  %p2885_p0 = scmp.lt.s32.totalorder %s2883_s8, %s2876_s21 }
  0x59   : > { %p2880_p11 = pneg %p2879_p7 }
  0x5a   : > { %p2886_p13 = por %p2885_p0, %p2884_p12 }
  0x5c   : > { %p2887_p4 = pnand %p2886_p13, %p2880_p11 }
  0x5e   : > { %2890 = shalt.err (!%p2887_p4)
}
  0x5f   : > { %2488 = dma.hbm_to_vmem [thread:$0]  (!%p3169_p6), %s227_s1, 32, %s230_s5, %s3174_s28  }
  0x60   : > { %238 = sbr.rel (%p3187_p10) target bundleno = 512 (0x200), region = 32  ;;  %s240_s0 = sand.u32 (!%p3187_p10), 1, %s3015_s19  }
  0x61   : > { %s2263_s3 = sshll.u32 (!%p3187_p10), %s240_s0, 9  ;;  %s241_s14 = scalar_lea.sflag (!%p3187_p10), [#allocation4], %s240_s0 }
  0x62   : > { %s3291_s17 = scalar_lea.vmem (!%p3187_p10), [#allocation3], %s2263_s3 }
  0x65   : > { %2974 = dma.done.wait (%p3221_p1), %s241_s14, 8192  }
  0x66   : > { %2976 = vsyncadd (%p3221_p1), %s241_s14, 4294959104  ;;  %s249_s20 = sand.u32 1, %s3192_s4   ;;  %s251_s28 = sand.u32 1, %s3003_s16  }
  0x67   : > { %s2264_s11 = sshll.u32 %s251_s28, 9  ;;  %s250_s9 = scalar_lea.sflag [#allocation7], %s249_s20 }
  0x68   : > { %s3301_s15 = scalar_lea.vmem [#allocation6], %s2264_s11 }
  0x69   : > { %2978 = dma.done.wait (%p3230_p9), %s250_s9, 8224  }
  0x6a   : > { %2980 = vsyncadd (%p3230_p9), %s250_s9, 4294959072  ;;  %v2615_v0 = vld [vmem:[%s3301_s15 + $0x74] ss:$8 sps:$4 sm:$0xff]   ;;  %v2619_v2 = vld [vmem:[%s3301_s15 + $0x70] ss:$8 sps:$4 sm:$0xff]   ;;  %s2265_s4 = sshll.u32 %s251_s28, 1 }
  0x6b   : > { %v2617_v1 = vld [vmem:[%s3301_s15 + $0x174] ss:$8 sps:$4 sm:$0xff]   ;;  %1202 = vmatprep.subr.bf16.mxu0 %v2615_v0  ;;  %v2620_v3 = vld [vmem:[%s3301_s15 + $0x170] ss:$8 sps:$4 sm:$0xff]   ;;  %v2621_v4 = vld [vmem:[%s3301_s15 + $0x64] ss:$8 sps:$4 sm:$0xff]  }
  0x6c   : > { %1395 = vmatprep.subr.bf16.mxu1 %v2617_v1  ;;  %1203 = vmatpush1.bf16.msra.mxu0 %v2619_v2  ;;  %v2623_v5 = vld [vmem:[%s3301_s15 + $0x164] ss:$8 sps:$4 sm:$0xff]   ;;  %v2625_v6 = vld [vmem:[%s3301_s15 + $0x60] ss:$8 sps:$4 sm:$0xff]   ;;  %v2627_v8 = vld [vmem:[%s3301_s15 + $0x54] ss:$8 sps:$4 sm:$0xff]  }
  0x6d   : > { %1396 = vmatpush1.bf16.msra.mxu1 %v2620_v3  ;;  %1204 = vmatprep.subr.bf16.mxu0 %v2621_v4  ;;  %v2626_v7 = vld [vmem:[%s3301_s15 + $0x160] ss:$8 sps:$4 sm:$0xff]   ;;  %v2629_v9 = vld [vmem:[%s3301_s15 + $0x154] ss:$8 sps:$4 sm:$0xff]   ;;  %v2631_v10 = vld [vmem:[%s3301_s15 + $0x50] ss:$8 sps:$4 sm:$0xff]  }
  0x6e   : > { %1397 = vmatprep.subr.bf16.mxu1 %v2623_v5  ;;  %v2632_v11 = vld [vmem:[%s3301_s15 + $0x150] ss:$8 sps:$4 sm:$0xff]   ;;  %v2633_v12 = vld [vmem:[%s3301_s15 + $0x44] ss:$8 sps:$4 sm:$0xff]   ;;  %v2637_v14 = vld [vmem:[%s3301_s15 + $0x40] ss:$8 sps:$4 sm:$0xff]  }
  0x6f   : > { %v2635_v13 = vld [vmem:[%s3301_s15 + $0x144] ss:$8 sps:$4 sm:$0xff]   ;;  %v2638_v15 = vld [vmem:[%s3301_s15 + $0x140] ss:$8 sps:$4 sm:$0xff]   ;;  %v2639_v16 = vld [vmem:[%s3301_s15 + $0x34] ss:$8 sps:$4 sm:$0xff]  }
  0x70   : > { %1205 = vmatpush1.bf16.msra.mxu0 %v2625_v6  ;;  %v2641_v17 = vld [vmem:[%s3301_s15 + $0x134] ss:$8 sps:$4 sm:$0xff]   ;;  %v2643_v18 = vld [vmem:[%s3301_s15 + $0x30] ss:$8 sps:$4 sm:$0xff]   ;;  %v2645_v20 = vld [vmem:[%s3301_s15 + $0x24] ss:$8 sps:$4 sm:$0xff]  }
  0x71   : > { %1398 = vmatpush1.bf16.msra.mxu1 %v2626_v7  ;;  %1206 = vmatprep.subr.bf16.mxu0 %v2627_v8  ;;  %v2644_v19 = vld [vmem:[%s3301_s15 + $0x130] ss:$8 sps:$4 sm:$0xff]   ;;  %v2647_v21 = vld [vmem:[%s3301_s15 + $0x124] ss:$8 sps:$4 sm:$0xff]   ;;  %v2649_v22 = vld [vmem:[%s3301_s15 + $0x20] ss:$8 sps:$4 sm:$0xff]  }
  0x72   : > { %1399 = vmatprep.subr.bf16.mxu1 %v2629_v9  ;;  %v2650_v23 = vld [vmem:[%s3301_s15 + $0x120] ss:$8 sps:$4 sm:$0xff]   ;;  %v2651_v24 = vld [vmem:[%s3301_s15 + $0x14] ss:$8 sps:$4 sm:$0xff]   ;;  %v2655_v26 = vld [vmem:[%s3301_s15 + $0x10] ss:$8 sps:$4 sm:$0xff]  }
  0x73   : > { %v2653_v25 = vld [vmem:[%s3301_s15 + $0x114] ss:$8 sps:$4 sm:$0xff]   ;;  %v2656_v27 = vld [vmem:[%s3301_s15 + $0x110] ss:$8 sps:$4 sm:$0xff]   ;;  %v2657_v28 = vld [vmem:[%s3301_s15 + $0x4] ss:$8 sps:$4 sm:$0xff]  }
  0x74   : > { %1207 = vmatpush1.bf16.msra.mxu0 %v2631_v10  ;;  %v2659_v29 = vld [vmem:[%s3301_s15 + $0x104] ss:$8 sps:$4 sm:$0xff]   ;;  %v2661_v30 = vld [vmem:[%s3301_s15] ss:$8 sps:$4 sm:$0xff]   ;;  %v2663_v32 = vld [vmem:[%s3301_s15 + $0xf4] ss:$8 sps:$4 sm:$0xff]  }
  0x75   : > { %1400 = vmatpush1.bf16.msra.mxu1 %v2632_v11  ;;  %1208 = vmatprep.subr.bf16.mxu0 %v2633_v12  ;;  %v2662_v31 = vld [vmem:[%s3301_s15 + $0x100] ss:$8 sps:$4 sm:$0xff]   ;;  %v2665_v33 = vld [vmem:[%s3301_s15 + $0x1f4] ss:$8 sps:$4 sm:$0xff]   ;;  %v2667_v34 = vld [vmem:[%s3301_s15 + $0xf0] ss:$8 sps:$4 sm:$0xff]  }
  0x76   : > { %1401 = vmatprep.subr.bf16.mxu1 %v2635_v13  ;;  %v2668_v35 = vld [vmem:[%s3301_s15 + $0x1f0] ss:$8 sps:$4 sm:$0xff]   ;;  %v2669_v36 = vld [vmem:[%s3301_s15 + $0xe4] ss:$8 sps:$4 sm:$0xff]   ;;  %v2673_v38 = vld [vmem:[%s3301_s15 + $0xe0] ss:$8 sps:$4 sm:$0xff]  }
  0x77   : > { %v2671_v37 = vld [vmem:[%s3301_s15 + $0x1e4] ss:$8 sps:$4 sm:$0xff]   ;;  %v2674_v39 = vld [vmem:[%s3301_s15 + $0x1e0] ss:$8 sps:$4 sm:$0xff]   ;;  %v2675_v40 = vld [vmem:[%s3301_s15 + $0xd4] ss:$8 sps:$4 sm:$0xff]  }
  0x78   : > { %1209 = vmatpush1.bf16.msra.mxu0 %v2637_v14  ;;  %v2677_v41 = vld [vmem:[%s3301_s15 + $0x1d4] ss:$8 sps:$4 sm:$0xff]   ;;  %v2679_v42 = vld [vmem:[%s3301_s15 + $0xd0] ss:$8 sps:$4 sm:$0xff]   ;;  %v2681_v44 = vld [vmem:[%s3301_s15 + $0xc4] ss:$8 sps:$4 sm:$0xff]  }
  0x79   : > { %1402 = vmatpush1.bf16.msra.mxu1 %v2638_v15  ;;  %1210 = vmatprep.subr.bf16.mxu0 %v2639_v16  ;;  %v2680_v43 = vld [vmem:[%s3301_s15 + $0x1d0] ss:$8 sps:$4 sm:$0xff]   ;;  %v2683_v45 = vld [vmem:[%s3301_s15 + $0x1c4] ss:$8 sps:$4 sm:$0xff]   ;;  %v2685_v46 = vld [vmem:[%s3301_s15 + $0xc0] ss:$8 sps:$4 sm:$0xff]  }
  0x7a   : > { %1403 = vmatprep.subr.bf16.mxu1 %v2641_v17  ;;  %v2686_v47 = vld [vmem:[%s3301_s15 + $0x1c0] ss:$8 sps:$4 sm:$0xff]   ;;  %v2687_v48 = vld [vmem:[%s3301_s15 + $0xb4] ss:$8 sps:$4 sm:$0xff]   ;;  %v2691_v52 = vld [vmem:[%s3301_s15 + $0xb0] ss:$8 sps:$4 sm:$0xff]  }
  0x7b   : > { %v2713_v49 = vld [vmem:[%s3291_s17 + $0x4] ss:$16 sps:$4 sm:$0xff]   ;;  %v2716_v51 = vld [vmem:[%s3291_s17 + $0xc] ss:$16 sps:$4 sm:$0xff]   ;;  %v2692_v53 = vld [vmem:[%s3301_s15 + $0x1b0] ss:$8 sps:$4 sm:$0xff]  }
  0x7c   : > { %1211 = vmatpush1.bf16.msra.mxu0 %v2643_v18  ;;  %v2689_v50 = vld [vmem:[%s3301_s15 + $0x1b4] ss:$8 sps:$4 sm:$0xff]   ;;  %1234 = vmatprep.mubr.bf16.mxu0 %v2713_v49  ;;  %v2693_v54 = vld [vmem:[%s3301_s15 + $0xa4] ss:$8 sps:$4 sm:$0xff]   ;;  %v2697_v56 = vld [vmem:[%s3301_s15 + $0xa0] ss:$8 sps:$4 sm:$0xff]  }
  0x7d   : > { %1404 = vmatpush1.bf16.msra.mxu1 %v2644_v19  ;;  %1212 = vmatprep.subr.bf16.mxu0 %v2645_v20  ;;  %v2695_v55 = vld [vmem:[%s3301_s15 + $0x1a4] ss:$8 sps:$4 sm:$0xff]   ;;  %v2698_v57 = vld [vmem:[%s3301_s15 + $0x1a0] ss:$8 sps:$4 sm:$0xff]   ;;  %v2699_v58 = vld [vmem:[%s3301_s15 + $0x94] ss:$8 sps:$4 sm:$0xff]  }
  0x7e   : > { %1405 = vmatprep.subr.bf16.mxu1 %v2647_v21  ;;  %1427 = vmatprep.mubr.bf16.mxu1 %v2716_v51  ;;  %v2701_v59 = vld [vmem:[%s3301_s15 + $0x194] ss:$8 sps:$4 sm:$0xff]   ;;  %v2703_v60 = vld [vmem:[%s3301_s15 + $0x90] ss:$8 sps:$4 sm:$0xff]   ;;  %v2705_v62 = vld [vmem:[%s3301_s15 + $0x84] ss:$8 sps:$4 sm:$0xff]  }
  0x7f   : > { %v2704_v61 = vld [vmem:[%s3301_s15 + $0x190] ss:$8 sps:$4 sm:$0xff]   ;;  %v2707_v63 = vld [vmem:[%s3301_s15 + $0x184] ss:$8 sps:$4 sm:$0xff]   ;;  %v2709_v0 = vld [vmem:[%s3301_s15 + $0x80] ss:$8 sps:$4 sm:$0xff]  }
  0x80   : > { %1213 = vmatpush1.bf16.msra.mxu0 %v2649_v22  ;;  %v2710_v1 = vld [vmem:[%s3301_s15 + $0x180] ss:$8 sps:$4 sm:$0xff]   ;;  %v2717_v4 = vld [vmem:[%s3291_s17 + $0x24] ss:$16 sps:$4 sm:$0xff]   ;;  %v2719_v5 = vld [vmem:[%s3291_s17 + $0x2c] ss:$16 sps:$4 sm:$0xff]  }
  0x81   : > { %1406 = vmatpush1.bf16.msra.mxu1 %v2650_v23  ;;  %1214 = vmatprep.subr.bf16.mxu0 %v2651_v24  ;;  %v2711_v2 = vld [vmem:[%s3291_s17] ss:$16 sps:$4 sm:$0xff]   ;;  %v2714_v3 = vld [vmem:[%s3291_s17 + $0x8] ss:$16 sps:$4 sm:$0xff]   ;;  %v2723_v8 = vld [vmem:[%s3291_s17 + $0x44] ss:$16 sps:$4 sm:$0xff]  }
  0x82   : > { %1407 = vmatprep.subr.bf16.mxu1 %v2653_v25  ;;  %v2721_v6 = vld [vmem:[%s3291_s17 + $0x20] ss:$16 sps:$4 sm:$0xff]   ;;  %v2722_v7 = vld [vmem:[%s3291_s17 + $0x28] ss:$16 sps:$4 sm:$0xff]   ;;  %v2725_v9 = vld [vmem:[%s3291_s17 + $0x4c] ss:$16 sps:$4 sm:$0xff]  }
  0x83   : > { %v2727_v10 = vld [vmem:[%s3291_s17 + $0x40] ss:$16 sps:$4 sm:$0xff]   ;;  %v2728_v11 = vld [vmem:[%s3291_s17 + $0x48] ss:$16 sps:$4 sm:$0xff]   ;;  %v2729_v12 = vld [vmem:[%s3291_s17 + $0x64] ss:$16 sps:$4 sm:$0xff]  }
  0x84   : > { %1215 = vmatpush1.bf16.msra.mxu0 %v2655_v26  ;;  %v2731_v13 = vld [vmem:[%s3291_s17 + $0x6c] ss:$16 sps:$4 sm:$0xff]   ;;  %v2733_v14 = vld [vmem:[%s3291_s17 + $0x60] ss:$16 sps:$4 sm:$0xff]   ;;  %v2734_v15 = vld [vmem:[%s3291_s17 + $0x68] ss:$16 sps:$4 sm:$0xff]  }
  0x85   : > { %1408 = vmatpush1.bf16.msra.mxu1 %v2656_v27  ;;  %1216 = vmatprep.subr.bf16.mxu0 %v2657_v28  ;;  %v2735_v16 = vld [vmem:[%s3291_s17 + $0x84] ss:$16 sps:$4 sm:$0xff]   ;;  %v2737_v17 = vld [vmem:[%s3291_s17 + $0x8c] ss:$16 sps:$4 sm:$0xff]   ;;  %v2739_v18 = vld [vmem:[%s3291_s17 + $0x80] ss:$16 sps:$4 sm:$0xff]  }
  0x86   : > { %1409 = vmatprep.subr.bf16.mxu1 %v2659_v29  ;;  %v2740_v19 = vld [vmem:[%s3291_s17 + $0x88] ss:$16 sps:$4 sm:$0xff]   ;;  %v2741_v20 = vld [vmem:[%s3291_s17 + $0xa4] ss:$16 sps:$4 sm:$0xff]   ;;  %v2743_v21 = vld [vmem:[%s3291_s17 + $0xac] ss:$16 sps:$4 sm:$0xff]  }
  0x87   : > { %v2745_v22 = vld [vmem:[%s3291_s17 + $0xa0] ss:$16 sps:$4 sm:$0xff]   ;;  %v2746_v23 = vld [vmem:[%s3291_s17 + $0xa8] ss:$16 sps:$4 sm:$0xff]   ;;  %v2747_v24 = vld [vmem:[%s3291_s17 + $0xc4] ss:$16 sps:$4 sm:$0xff]  }
  0x88   : > { %1217 = vmatpush1.bf16.msra.mxu0 %v2661_v30  ;;  %v2749_v25 = vld [vmem:[%s3291_s17 + $0xcc] ss:$16 sps:$4 sm:$0xff]   ;;  %v2751_v26 = vld [vmem:[%s3291_s17 + $0xc0] ss:$16 sps:$4 sm:$0xff]   ;;  %v2752_v27 = vld [vmem:[%s3291_s17 + $0xc8] ss:$16 sps:$4 sm:$0xff]  }
  0x89   : > { %1410 = vmatpush1.bf16.msra.mxu1 %v2662_v31  ;;  %1218 = vmatprep.subr.bf16.mxu0 %v2663_v32  ;;  %v2753_v28 = vld [vmem:[%s3291_s17 + $0xe4] ss:$16 sps:$4 sm:$0xff]   ;;  %v2755_v29 = vld [vmem:[%s3291_s17 + $0xec] ss:$16 sps:$4 sm:$0xff]   ;;  %v2757_v30 = vld [vmem:[%s3291_s17 + $0xe0] ss:$16 sps:$4 sm:$0xff]  }
  0x8a   : > { %1411 = vmatprep.subr.bf16.mxu1 %v2665_v33  ;;  %v2758_v31 = vld [vmem:[%s3291_s17 + $0xe8] ss:$16 sps:$4 sm:$0xff]   ;;  %v2759_v32 = vld [vmem:[%s3291_s17 + $0x104] ss:$16 sps:$4 sm:$0xff]   ;;  %v2761_v33 = vld [vmem:[%s3291_s17 + $0x10c] ss:$16 sps:$4 sm:$0xff]  }
  0x8b   : > { %v2785_v49 = vld [vmem:[%s3291_s17 + $0x18c] ss:$16 sps:$4 sm:$0xff]   ;;  %v2788_v51 = vld [vmem:[%s3291_s17 + $0x188] ss:$16 sps:$4 sm:$0xff]   ;;  %s262_s27 = scalar_lea.vmem [#allocation8], %s2265_s4  ;;  %s292_s29 = sand.u32 1, %s2991_s13  }
  0x8c   : > { %1219 = vmatpush2.bf16.msra.mxu0 %v2667_v34  ;;  %v2763_v34 = vld [vmem:[%s3291_s17 + $0x100] ss:$16 sps:$4 sm:$0xff]   ;;  %s2266_s8 = sshll.u32 %s292_s29, 8  ;;  %s3672_s10 = sld [smem:[#allocation16_spill]] }
  0x8d   : > { %1412 = vmatpush2.bf16.msra.mxu1 %v2668_v35  ;;  %1220 = vmatprep.subr.bf16.mxu0 %v2669_v36  ;;  %v2764_v35 = vld [vmem:[%s3291_s17 + $0x108] ss:$16 sps:$4 sm:$0xff]   ;;  %v2765_v36 = vld [vmem:[%s3291_s17 + $0x124] ss:$16 sps:$4 sm:$0xff]   ;;  %s3446_s22 = scalar_lea.vmem [#allocation9], %s2266_s8  ;;  %s3673_s7 = sld [smem:[#allocation17_spill]] }
  0x8e   : > { %1413 = vmatprep.subr.bf16.mxu1 %v2671_v37  ;;  %v2767_v37 = vld [vmem:[%s3291_s17 + $0x12c] ss:$16 sps:$4 sm:$0xff]   ;;  %s2109_s21 = sshll.u32 %s3446_s22, 4  ;;  %s3674_s0 = sld [smem:[#allocation27_spill]]  ;;  %s3549_s21 = int_to_ptr.vmem [resolvable:$true] %s2109_s21 }
  0x8f   : > { %s3554_s14 = scalar_lea.sflag [#allocation5], %s292_s29  ;;  %s3049_s20 = smov [#allocation9]  }
  0x90   : > { %1221 = vmatpush2.bf16.msra.mxu0 %v2673_v38  ;;  %v2769_v38 = vld [vmem:[%s3291_s17 + $0x120] ss:$16 sps:$4 sm:$0xff]   ;;  %s2895_s28 = sshll.u32 %s3049_s20, 4  ;;  %s2896_s28 = int_to_ptr.vmem [resolvable:$false] %s2895_s28 }
  0x91   : > { %1414 = vmatpush2.bf16.msra.mxu1 %v2674_v39  ;;  %1222 = vmatprep.subr.bf16.mxu0 %v2675_v40  ;;  %v2770_v39 = vld [vmem:[%s3291_s17 + $0x128] ss:$16 sps:$4 sm:$0xff]   ;;  %v2771_v40 = vld [vmem:[%s3291_s17 + $0x144] ss:$16 sps:$4 sm:$0xff]   ;;  %s2897_s11 = scalar_lea.vmem %s2896_s28, 8192  ;;  %p2898_p9 = scmp.lt.s32.totalorder %s3549_s21, %s2896_s28 }
  0x92   : > { %1415 = vmatprep.subr.bf16.mxu1 %v2677_v41  ;;  %v2773_v41 = vld [vmem:[%s3291_s17 + $0x14c] ss:$16 sps:$4 sm:$0xff]   ;;  %s2429_s18 = sshll.u32 %s3672_s10, 1 }
  0x93   : > { %s2470_s30 = sshll.u32 %s3673_s7, 8 }
  0x94   : > { %1223 = vmatpush2.bf16.msra.mxu0 %v2679_v42  ;;  %v2775_v42 = vld [vmem:[%s3291_s17 + $0x140] ss:$16 sps:$4 sm:$0xff]   ;;  %s2106_s5 = sadd.s32 %s2470_s30, %s2429_s18 }
  0x95   : > { %1416 = vmatpush2.bf16.msra.mxu1 %v2680_v43  ;;  %1224 = vmatprep.subr.bf16.mxu0 %v2681_v44  ;;  %v2776_v43 = vld [vmem:[%s3291_s17 + $0x148] ss:$16 sps:$4 sm:$0xff]   ;;  %v2777_v44 = vld [vmem:[%s3291_s17 + $0x164] ss:$16 sps:$4 sm:$0xff]   ;;  %s2431_s1 = sshll.u32 %s2106_s5, 6 }
  0x96   : > { %1417 = vmatprep.subr.bf16.mxu1 %v2683_v45  ;;  %v2779_v45 = vld [vmem:[%s3291_s17 + $0x16c] ss:$16 sps:$4 sm:$0xff]   ;;  %s3547_s3 = scalar_lea.hbm %s3674_s0, %s2431_s1 }
  0x98   : > { %1225 = vmatpush2.bf16.msra.mxu0 %v2685_v46  ;;  %v2781_v46 = vld [vmem:[%s3291_s17 + $0x160] ss:$16 sps:$4 sm:$0xff]  }
  0x99   : > { %1418 = vmatpush2.bf16.msra.mxu1 %v2686_v47  ;;  %1226 = vmatprep.subr.bf16.mxu0 %v2687_v48  ;;  %v2782_v47 = vld [vmem:[%s3291_s17 + $0x168] ss:$16 sps:$4 sm:$0xff]   ;;  %v2783_v48 = vld [vmem:[%s3291_s17 + $0x184] ss:$16 sps:$4 sm:$0xff]  }
  0x9a   : > { %1419 = vmatprep.subr.bf16.mxu1 %v2689_v50  ;;  %v2787_v50 = vld [vmem:[%s3291_s17 + $0x180] ss:$16 sps:$4 sm:$0xff]  }
  0x9c   : > { %1227 = vmatpush2.bf16.msra.mxu0 %v2691_v52  ;;  %v2789_v52 = vld [vmem:[%s3291_s17 + $0x1a4] ss:$16 sps:$4 sm:$0xff]  }
  0x9d   : > { %1420 = vmatpush2.bf16.msra.mxu1 %v2692_v53  ;;  %1228 = vmatprep.subr.bf16.mxu0 %v2693_v54  ;;  %v2791_v53 = vld [vmem:[%s3291_s17 + $0x1ac] ss:$16 sps:$4 sm:$0xff]   ;;  %v2793_v54 = vld [vmem:[%s3291_s17 + $0x1a0] ss:$16 sps:$4 sm:$0xff]  }
  0x9e   : > { %1421 = vmatprep.subr.bf16.mxu1 %v2695_v55  ;;  %v2794_v55 = vld [vmem:[%s3291_s17 + $0x1a8] ss:$16 sps:$4 sm:$0xff]  }
  0xa0   : > { %1229 = vmatpush2.bf16.msra.mxu0 %v2697_v56  ;;  %v2795_v56 = vld [vmem:[%s3291_s17 + $0x1c4] ss:$16 sps:$4 sm:$0xff]  }
  0xa1   : > { %1422 = vmatpush2.bf16.msra.mxu1 %v2698_v57  ;;  %1230 = vmatprep.subr.bf16.mxu0 %v2699_v58  ;;  %v2797_v57 = vld [vmem:[%s3291_s17 + $0x1cc] ss:$16 sps:$4 sm:$0xff]   ;;  %v2799_v58 = vld [vmem:[%s3291_s17 + $0x1c0] ss:$16 sps:$4 sm:$0xff]  }
  0xa2   : > { %1423 = vmatprep.subr.bf16.mxu1 %v2701_v59  ;;  %v2800_v59 = vld [vmem:[%s3291_s17 + $0x1c8] ss:$16 sps:$4 sm:$0xff]  }
  0xa4   : > { %1231 = vmatpush2.bf16.msra.mxu0 %v2703_v60  ;;  %v2801_v60 = vld [vmem:[%s3291_s17 + $0x1e4] ss:$16 sps:$4 sm:$0xff]  }
  0xa5   : > { %1424 = vmatpush2.bf16.msra.mxu1 %v2704_v61  ;;  %1232 = vmatprep.subr.bf16.mxu0 %v2705_v62  ;;  %v2803_v61 = vld [vmem:[%s3291_s17 + $0x1ec] ss:$16 sps:$4 sm:$0xff]   ;;  %v2805_v62 = vld [vmem:[%s3291_s17 + $0x1e0] ss:$16 sps:$4 sm:$0xff]  }
  0xa6   : > { %1425 = vmatprep.subr.bf16.mxu1 %v2707_v63  ;;  %v2806_v63 = vld [vmem:[%s3291_s17 + $0x1e8] ss:$16 sps:$4 sm:$0xff]   ;;  %s2891_s17 = scalar_lea.vmem %s3549_s21, 4096 }
  0xa7   : > { %p2892_p6 = scmp.ne.s32.totalorder %s3549_s21, %s2891_s17  ;;  %p2899_p2 = scmp.lt.s32.totalorder %s2897_s11, %s2891_s17 }
  0xa8   : > { %1233 = vmatpush2.bf16.msra.mxu0 %v2709_v0  ;;  %v1786_v0 = vlaneseq }
  0xa9   : > { %1426 = vmatpush2.bf16.msra.mxu1 %v2710_v1  ;;  %p2893_p10 = pnand %p2892_p6, %p3249_p3  ;;  %p2900_p8 = por %p2899_p2, %p2898_p9 }
  0xaa   : > { %v1787_v1 = vshrl.u32 %v1786_v0, 7 }
  0xab   : > { %1235 = vmatmul.mubr.bf16.vlgmr.msra.gmra.mxu0 %v2711_v2  ;;  %v1783_v2 = vld [vmem:[%s262_s27] sm:$0x3]  ;;  %p2894_p1 = pneg %p2893_p10 }
  0xac   : > { %1428 = vmatmul.mubr.bf16.vlgmr.msra.gmra.mxu1 %v2714_v3  ;;  %1244 = vmatprep.mubr.bf16.mxu0 %v2717_v4  ;;  %v1784_v3 = vunpack.c.l.bf16 %v1783_v2  ;;  %v1788_v4 = vsub.s32 0, %v1787_v1 }
  0xad   : > { %1437 = vmatprep.mubr.bf16.mxu1 %v2719_v5  ;;  %v1792_v5 = vsub.s32 2, %v1787_v1  ;;  %p2901_p5 = pnand %p2900_p8, %p2894_p1 }
  0xb3   : > { %1245 = vmatmul.mubr.bf16.gmra.mxu0 %v2721_v6  ;;  %v1789_v6 = vrot.slane %v1784_v3, %v1788_v4 }
  0xb4   : > { %1438 = vmatmul.mubr.bf16.gmra.mxu1 %v2722_v7  ;;  %1254 = vmatprep.mubr.bf16.mxu0 %v2723_v8  ;;  %v1793_v7 = vrot.slane %v1784_v3, %v1792_v5 }
  0xb5   : > { %1447 = vmatprep.mubr.bf16.mxu1 %v2725_v9 }
  0xbb   : > { %1255 = vmatmul.mubr.bf16.gmra.mxu0 %v2727_v10 }
  0xbc   : > { %1448 = vmatmul.mubr.bf16.gmra.mxu1 %v2728_v11  ;;  %1264 = vmatprep.mubr.bf16.mxu0 %v2729_v12  ;;  %v3438_v11 = vrot.slane %v1789_v6, %v1788_v4  ;;  %v3440_v12 = vrot.slane %v1793_v7, %v1788_v4 }
  0xbd   : > { %1457 = vmatprep.mubr.bf16.mxu1 %v2731_v13 }
  0xc3   : > { %1265 = vmatmul.mubr.bf16.gmra.mxu0 %v2733_v14 }
  0xc4   : > { %1458 = vmatmul.mubr.bf16.gmra.mxu1 %v2734_v15  ;;  %1274 = vmatprep.mubr.bf16.mxu0 %v2735_v16 }
  0xc5   : > { %1467 = vmatprep.mubr.bf16.mxu1 %v2737_v17 }
  0xcb   : > { %1275 = vmatmul.mubr.bf16.gmra.mxu0 %v2739_v18 }
  0xcc   : > { %1468 = vmatmul.mubr.bf16.gmra.mxu1 %v2740_v19  ;;  %1284 = vmatprep.mubr.bf16.mxu0 %v2741_v20 }
  0xcd   : > { %1477 = vmatprep.mubr.bf16.mxu1 %v2743_v21 }
  0xd3   : > { %1285 = vmatmul.mubr.bf16.gmra.mxu0 %v2745_v22 }
  0xd4   : > { %1478 = vmatmul.mubr.bf16.gmra.mxu1 %v2746_v23  ;;  %1294 = vmatprep.mubr.bf16.mxu0 %v2747_v24 }
  0xd5   : > { %1487 = vmatprep.mubr.bf16.mxu1 %v2749_v25 }
  0xdb   : > { %1295 = vmatmul.mubr.bf16.gmra.mxu0 %v2751_v26 }
  0xdc   : > { %1488 = vmatmul.mubr.bf16.gmra.mxu1 %v2752_v27  ;;  %1304 = vmatprep.mubr.bf16.mxu0 %v2753_v28 }
  0xdd   : > { %1497 = vmatprep.mubr.bf16.mxu1 %v2755_v29 }
  0xe3   : > { %1305 = vmatmul.mubr.bf16.gmra.mxu0 %v2757_v30 }
  0xe4   : > { %1498 = vmatmul.mubr.bf16.gmra.mxu1 %v2758_v31  ;;  %1314 = vmatprep.mubr.bf16.mxu0 %v2759_v32 }
  0xe5   : > { %1507 = vmatprep.mubr.bf16.mxu1 %v2761_v33 }
  0xeb   : > { %1315 = vmatmul.mubr.bf16.gmra.mxu0 %v2763_v34 }
  0xec   : > { %1508 = vmatmul.mubr.bf16.gmra.mxu1 %v2764_v35  ;;  %1324 = vmatprep.mubr.bf16.mxu0 %v2765_v36 }
  0xed   : > { %1517 = vmatprep.mubr.bf16.mxu1 %v2767_v37 }
  0xf3   : > { %1325 = vmatmul.mubr.bf16.gmra.mxu0 %v2769_v38 }
  0xf4   : > { %1518 = vmatmul.mubr.bf16.gmra.mxu1 %v2770_v39  ;;  %1334 = vmatprep.mubr.bf16.mxu0 %v2771_v40 }
  0xf5   : > { %1527 = vmatprep.mubr.bf16.mxu1 %v2773_v41 }
  0xfb   : > { %1335 = vmatmul.mubr.bf16.gmra.mxu0 %v2775_v42 }
  0xfc   : > { %1528 = vmatmul.mubr.bf16.gmra.mxu1 %v2776_v43  ;;  %1344 = vmatprep.mubr.bf16.mxu0 %v2777_v44 }
  0xfd   : > { %1537 = vmatprep.mubr.bf16.mxu1 %v2779_v45 }
 0x103   : > { %1345 = vmatmul.mubr.bf16.gmra.mxu0 %v2781_v46 }
 0x104   : > { %1538 = vmatmul.mubr.bf16.gmra.mxu1 %v2782_v47  ;;  %1354 = vmatprep.mubr.bf16.mxu0 %v2783_v48 }
 0x105   : > { %1547 = vmatprep.mubr.bf16.mxu1 %v2785_v49 }
 0x10b   : > { %1355 = vmatmul.mubr.bf16.gmra.mxu0 %v2787_v50 }
 0x10c   : > { %1548 = vmatmul.mubr.bf16.gmra.mxu1 %v2788_v51  ;;  %1364 = vmatprep.mubr.bf16.mxu0 %v2789_v52 }
 0x10d   : > { %1557 = vmatprep.mubr.bf16.mxu1 %v2791_v53 }
 0x113   : > { %1365 = vmatmul.mubr.bf16.gmra.mxu0 %v2793_v54 }
 0x114   : > { %1558 = vmatmul.mubr.bf16.gmra.mxu1 %v2794_v55  ;;  %1374 = vmatprep.mubr.bf16.mxu0 %v2795_v56 }
 0x115   : > { %1567 = vmatprep.mubr.bf16.mxu1 %v2797_v57 }
 0x11b   : > { %1375 = vmatmul.mubr.bf16.gmra.mxu0 %v2799_v58 }
 0x11c   : > { %1568 = vmatmul.mubr.bf16.gmra.mxu1 %v2800_v59  ;;  %1384 = vmatprep.mubr.bf16.mxu0 %v2801_v60 }
 0x11d   : > { %1577 = vmatprep.mubr.bf16.mxu1 %v2803_v61 }
 0x123   : > { %1385 = vmatmul.mubr.bf16.gmra.mxu0 %v2805_v62 }
 0x124   : > { %1578 = vmatmul.mubr.bf16.gmra.mxu1 %v2806_v63 }
 0x16b   : > { %v1236_v8 = vpop.f32.mrf.mxu0 }
 0x16c   : > { %v1429_v9 = vpop.f32.mrf.mxu1 }
 0x16d   : > { %v1430_v10 = vadd.f32 %v1429_v9, %v1236_v8  ;;  %v1238_v13 = vpop.f32.mrf.mxu0 }
 0x16e   : > { %v1431_v14 = vpop.f32.mrf.mxu1 }
 0x16f   : > { %v1432_v15 = vadd.f32 %v1431_v14, %v1238_v13  ;;  %v1240_v16 = vpop.f32.mrf.mxu0  ;;  %v1804_v18 = vadd.f32 %v3438_v11, %v1430_v10 }
 0x170   : > { %v1433_v17 = vpop.f32.mrf.mxu1 }
 0x171   : > { %v1805_v19 = vadd.f32 %v3440_v12, %v1432_v15  ;;  %v1434_v20 = vadd.f32 %v1433_v17, %v1240_v16  ;;  %v1242_v21 = vpop.f32.mrf.mxu0 }
 0x172   : > { %v1435_v22 = vpop.f32.mrf.mxu1 }
 0x173   : > { %v2438_v23 = vpack.c.bf16 %v1805_v19, %v1804_v18  ;;  %v1436_v24 = vadd.f32 %v1435_v22, %v1242_v21  ;;  %v1246_v25 = vpop.f32.mrf.mxu0  ;;  %v1806_v27 = vadd.f32 %v3438_v11, %v1434_v20 }
 0x174   : > { %v1439_v26 = vpop.f32.mrf.mxu1 }
 0x175   : > { %2060 = vst [vmem:[%s3446_s22] sm:$0xff] %v2438_v23  ;;  %v1807_v28 = vadd.f32 %v3440_v12, %v1436_v24  ;;  %v1440_v29 = vadd.f32 %v1439_v26, %v1246_v25  ;;  %v1248_v30 = vpop.f32.mrf.mxu0 }
 0x176   : > { %v1441_v31 = vpop.f32.mrf.mxu1 }
 0x177   : > { %v2439_v32 = vpack.c.bf16 %v1807_v28, %v1806_v27  ;;  %v1442_v33 = vadd.f32 %v1441_v31, %v1248_v30  ;;  %v1250_v34 = vpop.f32.mrf.mxu0  ;;  %v1808_v36 = vadd.f32 %v3438_v11, %v1440_v29 }
 0x178   : > { %v1443_v35 = vpop.f32.mrf.mxu1 }
 0x179   : > { %2061 = vst [vmem:[%s3446_s22 + $0x8] sm:$0xff] %v2439_v32  ;;  %v1809_v37 = vadd.f32 %v3440_v12, %v1442_v33  ;;  %v1444_v38 = vadd.f32 %v1443_v35, %v1250_v34  ;;  %v1252_v39 = vpop.f32.mrf.mxu0 }
 0x17a   : > { %v1445_v40 = vpop.f32.mrf.mxu1 }
 0x17b   : > { %v2440_v41 = vpack.c.bf16 %v1809_v37, %v1808_v36  ;;  %v1446_v42 = vadd.f32 %v1445_v40, %v1252_v39  ;;  %v1256_v43 = vpop.f32.mrf.mxu0  ;;  %v1810_v45 = vadd.f32 %v3438_v11, %v1444_v38 }
 0x17c   : > { %v1449_v44 = vpop.f32.mrf.mxu1 }
 0x17d   : > { %2062 = vst [vmem:[%s3446_s22 + $0x10] sm:$0xff] %v2440_v41  ;;  %v1811_v46 = vadd.f32 %v3440_v12, %v1446_v42  ;;  %v1450_v47 = vadd.f32 %v1449_v44, %v1256_v43  ;;  %v1258_v48 = vpop.f32.mrf.mxu0 }
 0x17e   : > { %v1451_v49 = vpop.f32.mrf.mxu1 }
 0x17f   : > { %v2441_v50 = vpack.c.bf16 %v1811_v46, %v1810_v45  ;;  %v1452_v51 = vadd.f32 %v1451_v49, %v1258_v48  ;;  %v1260_v52 = vpop.f32.mrf.mxu0  ;;  %v1812_v54 = vadd.f32 %v3438_v11, %v1450_v47 }
 0x180   : > { %v1453_v53 = vpop.f32.mrf.mxu1 }
 0x181   : > { %2063 = vst [vmem:[%s3446_s22 + $0x18] sm:$0xff] %v2441_v50  ;;  %v1813_v55 = vadd.f32 %v3440_v12, %v1452_v51  ;;  %v1454_v56 = vadd.f32 %v1453_v53, %v1260_v52  ;;  %v1262_v57 = vpop.f32.mrf.mxu0 }
 0x182   : > { %v1455_v58 = vpop.f32.mrf.mxu1 }
 0x183   : > { %v2442_v59 = vpack.c.bf16 %v1813_v55, %v1812_v54  ;;  %v1456_v60 = vadd.f32 %v1455_v58, %v1262_v57  ;;  %v1266_v61 = vpop.f32.mrf.mxu0  ;;  %v1814_v63 = vadd.f32 %v3438_v11, %v1454_v56 }
 0x184   : > { %v1459_v62 = vpop.f32.mrf.mxu1 }
 0x185   : > { %2064 = vst [vmem:[%s3446_s22 + $0x20] sm:$0xff] %v2442_v59  ;;  %v1815_v0 = vadd.f32 %v3440_v12, %v1456_v60  ;;  %v1460_v1 = vadd.f32 %v1459_v62, %v1266_v61  ;;  %v1268_v2 = vpop.f32.mrf.mxu0 }
 0x186   : > { %v1461_v3 = vpop.f32.mrf.mxu1 }
 0x187   : > { %v2443_v4 = vpack.c.bf16 %v1815_v0, %v1814_v63  ;;  %v1462_v5 = vadd.f32 %v1461_v3, %v1268_v2  ;;  %v1270_v6 = vpop.f32.mrf.mxu0  ;;  %v1816_v8 = vadd.f32 %v3438_v11, %v1460_v1 }
 0x188   : > { %v1463_v7 = vpop.f32.mrf.mxu1 }
 0x189   : > { %2065 = vst [vmem:[%s3446_s22 + $0x28] sm:$0xff] %v2443_v4  ;;  %v1817_v9 = vadd.f32 %v3440_v12, %v1462_v5  ;;  %v1464_v10 = vadd.f32 %v1463_v7, %v1270_v6  ;;  %v1272_v13 = vpop.f32.mrf.mxu0 }
 0x18a   : > { %v1465_v14 = vpop.f32.mrf.mxu1 }
 0x18b   : > { %v2444_v15 = vpack.c.bf16 %v1817_v9, %v1816_v8  ;;  %v1466_v16 = vadd.f32 %v1465_v14, %v1272_v13  ;;  %v1276_v17 = vpop.f32.mrf.mxu0  ;;  %v1818_v19 = vadd.f32 %v3438_v11, %v1464_v10 }
 0x18c   : > { %v1469_v18 = vpop.f32.mrf.mxu1 }
 0x18d   : > { %2066 = vst [vmem:[%s3446_s22 + $0x30] sm:$0xff] %v2444_v15  ;;  %v1819_v20 = vadd.f32 %v3440_v12, %v1466_v16  ;;  %v1470_v21 = vadd.f32 %v1469_v18, %v1276_v17  ;;  %v1278_v22 = vpop.f32.mrf.mxu0 }
 0x18e   : > { %v1471_v23 = vpop.f32.mrf.mxu1 }
 0x18f   : > { %v2445_v24 = vpack.c.bf16 %v1819_v20, %v1818_v19  ;;  %v1472_v25 = vadd.f32 %v1471_v23, %v1278_v22  ;;  %v1280_v26 = vpop.f32.mrf.mxu0  ;;  %v1820_v28 = vadd.f32 %v3438_v11, %v1470_v21 }
 0x190   : > { %v1473_v27 = vpop.f32.mrf.mxu1 }
 0x191   : > { %2067 = vst [vmem:[%s3446_s22 + $0x38] sm:$0xff] %v2445_v24  ;;  %v1821_v29 = vadd.f32 %v3440_v12, %v1472_v25  ;;  %v1474_v30 = vadd.f32 %v1473_v27, %v1280_v26  ;;  %v1282_v31 = vpop.f32.mrf.mxu0 }
 0x192   : > { %v1475_v32 = vpop.f32.mrf.mxu1 }
 0x193   : > { %v2446_v33 = vpack.c.bf16 %v1821_v29, %v1820_v28  ;;  %v1476_v34 = vadd.f32 %v1475_v32, %v1282_v31  ;;  %v1286_v35 = vpop.f32.mrf.mxu0  ;;  %v1822_v37 = vadd.f32 %v3438_v11, %v1474_v30 }
 0x194   : > { %v1479_v36 = vpop.f32.mrf.mxu1 }
 0x195   : > { %2068 = vst [vmem:[%s3446_s22 + $0x40] sm:$0xff] %v2446_v33  ;;  %v1823_v38 = vadd.f32 %v3440_v12, %v1476_v34  ;;  %v1480_v39 = vadd.f32 %v1479_v36, %v1286_v35  ;;  %v1288_v40 = vpop.f32.mrf.mxu0 }
 0x196   : > { %v1481_v41 = vpop.f32.mrf.mxu1 }
 0x197   : > { %v2447_v42 = vpack.c.bf16 %v1823_v38, %v1822_v37  ;;  %v1482_v43 = vadd.f32 %v1481_v41, %v1288_v40  ;;  %v1290_v44 = vpop.f32.mrf.mxu0  ;;  %v1824_v46 = vadd.f32 %v3438_v11, %v1480_v39 }
 0x198   : > { %v1483_v45 = vpop.f32.mrf.mxu1 }
 0x199   : > { %2069 = vst [vmem:[%s3446_s22 + $0x48] sm:$0xff] %v2447_v42  ;;  %v1825_v47 = vadd.f32 %v3440_v12, %v1482_v43  ;;  %v1484_v48 = vadd.f32 %v1483_v45, %v1290_v44  ;;  %v1292_v49 = vpop.f32.mrf.mxu0 }
 0x19a   : > { %v1485_v50 = vpop.f32.mrf.mxu1 }
 0x19b   : > { %v2448_v51 = vpack.c.bf16 %v1825_v47, %v1824_v46  ;;  %v1486_v52 = vadd.f32 %v1485_v50, %v1292_v49  ;;  %v1296_v53 = vpop.f32.mrf.mxu0  ;;  %v1826_v55 = vadd.f32 %v3438_v11, %v1484_v48 }
 0x19c   : > { %v1489_v54 = vpop.f32.mrf.mxu1 }
 0x19d   : > { %2070 = vst [vmem:[%s3446_s22 + $0x50] sm:$0xff] %v2448_v51  ;;  %v1827_v56 = vadd.f32 %v3440_v12, %v1486_v52  ;;  %v1490_v57 = vadd.f32 %v1489_v54, %v1296_v53  ;;  %v1298_v58 = vpop.f32.mrf.mxu0 }
 0x19e   : > { %v1491_v59 = vpop.f32.mrf.mxu1 }
 0x19f   : > { %v2449_v60 = vpack.c.bf16 %v1827_v56, %v1826_v55  ;;  %v1492_v61 = vadd.f32 %v1491_v59, %v1298_v58  ;;  %v1300_v62 = vpop.f32.mrf.mxu0  ;;  %v1828_v0 = vadd.f32 %v3438_v11, %v1490_v57 }
 0x1a0   : > { %v1493_v63 = vpop.f32.mrf.mxu1 }
 0x1a1   : > { %2071 = vst [vmem:[%s3446_s22 + $0x58] sm:$0xff] %v2449_v60  ;;  %v1829_v1 = vadd.f32 %v3440_v12, %v1492_v61  ;;  %v1494_v2 = vadd.f32 %v1493_v63, %v1300_v62  ;;  %v1302_v3 = vpop.f32.mrf.mxu0 }
 0x1a2   : > { %v1495_v4 = vpop.f32.mrf.mxu1 }
 0x1a3   : > { %v2450_v5 = vpack.c.bf16 %v1829_v1, %v1828_v0  ;;  %v1496_v6 = vadd.f32 %v1495_v4, %v1302_v3  ;;  %v1306_v7 = vpop.f32.mrf.mxu0  ;;  %v1830_v9 = vadd.f32 %v3438_v11, %v1494_v2 }
 0x1a4   : > { %v1499_v8 = vpop.f32.mrf.mxu1 }
 0x1a5   : > { %2072 = vst [vmem:[%s3446_s22 + $0x60] sm:$0xff] %v2450_v5  ;;  %v1831_v10 = vadd.f32 %v3440_v12, %v1496_v6  ;;  %v1500_v13 = vadd.f32 %v1499_v8, %v1306_v7  ;;  %v1308_v14 = vpop.f32.mrf.mxu0 }
 0x1a6   : > { %v1501_v15 = vpop.f32.mrf.mxu1 }
 0x1a7   : > { %v2451_v16 = vpack.c.bf16 %v1831_v10, %v1830_v9  ;;  %v1502_v17 = vadd.f32 %v1501_v15, %v1308_v14  ;;  %v1310_v18 = vpop.f32.mrf.mxu0  ;;  %v1832_v20 = vadd.f32 %v3438_v11, %v1500_v13 }
 0x1a8   : > { %v1503_v19 = vpop.f32.mrf.mxu1 }
 0x1a9   : > { %2073 = vst [vmem:[%s3446_s22 + $0x68] sm:$0xff] %v2451_v16  ;;  %v1833_v21 = vadd.f32 %v3440_v12, %v1502_v17  ;;  %v1504_v22 = vadd.f32 %v1503_v19, %v1310_v18  ;;  %v1312_v23 = vpop.f32.mrf.mxu0 }
 0x1aa   : > { %v1505_v24 = vpop.f32.mrf.mxu1 }
 0x1ab   : > { %v2452_v25 = vpack.c.bf16 %v1833_v21, %v1832_v20  ;;  %v1506_v26 = vadd.f32 %v1505_v24, %v1312_v23  ;;  %v1316_v27 = vpop.f32.mrf.mxu0  ;;  %v1834_v29 = vadd.f32 %v3438_v11, %v1504_v22 }
 0x1ac   : > { %v1509_v28 = vpop.f32.mrf.mxu1 }
 0x1ad   : > { %2074 = vst [vmem:[%s3446_s22 + $0x70] sm:$0xff] %v2452_v25  ;;  %v1835_v30 = vadd.f32 %v3440_v12, %v1506_v26  ;;  %v1510_v31 = vadd.f32 %v1509_v28, %v1316_v27  ;;  %v1318_v32 = vpop.f32.mrf.mxu0 }
 0x1ae   : > { %v1511_v33 = vpop.f32.mrf.mxu1 }
 0x1af   : > { %v2453_v34 = vpack.c.bf16 %v1835_v30, %v1834_v29  ;;  %v1512_v35 = vadd.f32 %v1511_v33, %v1318_v32  ;;  %v1320_v36 = vpop.f32.mrf.mxu0  ;;  %v1836_v38 = vadd.f32 %v3438_v11, %v1510_v31 }
 0x1b0   : > { %v1513_v37 = vpop.f32.mrf.mxu1 }
 0x1b1   : > { %2075 = vst [vmem:[%s3446_s22 + $0x78] sm:$0xff] %v2453_v34  ;;  %v1837_v39 = vadd.f32 %v3440_v12, %v1512_v35  ;;  %v1514_v40 = vadd.f32 %v1513_v37, %v1320_v36  ;;  %v1322_v41 = vpop.f32.mrf.mxu0 }
 0x1b2   : > { %v1515_v42 = vpop.f32.mrf.mxu1 }
 0x1b3   : > { %v2454_v43 = vpack.c.bf16 %v1837_v39, %v1836_v38  ;;  %v1516_v44 = vadd.f32 %v1515_v42, %v1322_v41  ;;  %v1326_v45 = vpop.f32.mrf.mxu0  ;;  %v1838_v47 = vadd.f32 %v3438_v11, %v1514_v40 }
 0x1b4   : > { %v1519_v46 = vpop.f32.mrf.mxu1 }
 0x1b5   : > { %2076 = vst [vmem:[%s3446_s22 + $0x80] sm:$0xff] %v2454_v43  ;;  %v1839_v48 = vadd.f32 %v3440_v12, %v1516_v44  ;;  %v1520_v49 = vadd.f32 %v1519_v46, %v1326_v45  ;;  %v1328_v50 = vpop.f32.mrf.mxu0 }
 0x1b6   : > { %v1521_v51 = vpop.f32.mrf.mxu1 }
 0x1b7   : > { %v2455_v52 = vpack.c.bf16 %v1839_v48, %v1838_v47  ;;  %v1522_v53 = vadd.f32 %v1521_v51, %v1328_v50  ;;  %v1330_v54 = vpop.f32.mrf.mxu0  ;;  %v1840_v56 = vadd.f32 %v3438_v11, %v1520_v49 }
 0x1b8   : > { %v1523_v55 = vpop.f32.mrf.mxu1 }
 0x1b9   : > { %2077 = vst [vmem:[%s3446_s22 + $0x88] sm:$0xff] %v2455_v52  ;;  %v1841_v57 = vadd.f32 %v3440_v12, %v1522_v53  ;;  %v1524_v58 = vadd.f32 %v1523_v55, %v1330_v54  ;;  %v1332_v59 = vpop.f32.mrf.mxu0 }
 0x1ba   : > { %v1525_v60 = vpop.f32.mrf.mxu1 }
 0x1bb   : > { %v2456_v61 = vpack.c.bf16 %v1841_v57, %v1840_v56  ;;  %v1526_v62 = vadd.f32 %v1525_v60, %v1332_v59  ;;  %v1336_v63 = vpop.f32.mrf.mxu0  ;;  %v1842_v1 = vadd.f32 %v3438_v11, %v1524_v58 }
 0x1bc   : > { %v1529_v0 = vpop.f32.mrf.mxu1 }
 0x1bd   : > { %2078 = vst [vmem:[%s3446_s22 + $0x90] sm:$0xff] %v2456_v61  ;;  %v1843_v2 = vadd.f32 %v3440_v12, %v1526_v62  ;;  %v1530_v3 = vadd.f32 %v1529_v0, %v1336_v63  ;;  %v1338_v4 = vpop.f32.mrf.mxu0 }
 0x1be   : > { %v1531_v5 = vpop.f32.mrf.mxu1 }
 0x1bf   : > { %v2457_v6 = vpack.c.bf16 %v1843_v2, %v1842_v1  ;;  %v1532_v7 = vadd.f32 %v1531_v5, %v1338_v4  ;;  %v1340_v8 = vpop.f32.mrf.mxu0  ;;  %v1844_v10 = vadd.f32 %v3438_v11, %v1530_v3 }
 0x1c0   : > { %v1533_v9 = vpop.f32.mrf.mxu1 }
 0x1c1   : > { %2079 = vst [vmem:[%s3446_s22 + $0x98] sm:$0xff] %v2457_v6  ;;  %v1845_v13 = vadd.f32 %v3440_v12, %v1532_v7  ;;  %v1534_v14 = vadd.f32 %v1533_v9, %v1340_v8  ;;  %v1342_v15 = vpop.f32.mrf.mxu0 }
 0x1c2   : > { %v1535_v16 = vpop.f32.mrf.mxu1 }
 0x1c3   : > { %v2458_v17 = vpack.c.bf16 %v1845_v13, %v1844_v10  ;;  %v1536_v18 = vadd.f32 %v1535_v16, %v1342_v15  ;;  %v1346_v19 = vpop.f32.mrf.mxu0  ;;  %v1846_v21 = vadd.f32 %v3438_v11, %v1534_v14 }
 0x1c4   : > { %v1539_v20 = vpop.f32.mrf.mxu1 }
 0x1c5   : > { %2080 = vst [vmem:[%s3446_s22 + $0xa0] sm:$0xff] %v2458_v17  ;;  %v1847_v22 = vadd.f32 %v3440_v12, %v1536_v18  ;;  %v1540_v23 = vadd.f32 %v1539_v20, %v1346_v19  ;;  %v1348_v24 = vpop.f32.mrf.mxu0 }
 0x1c6   : > { %v1541_v25 = vpop.f32.mrf.mxu1 }
 0x1c7   : > { %v2459_v26 = vpack.c.bf16 %v1847_v22, %v1846_v21  ;;  %v1542_v27 = vadd.f32 %v1541_v25, %v1348_v24  ;;  %v1350_v28 = vpop.f32.mrf.mxu0  ;;  %v1848_v30 = vadd.f32 %v3438_v11, %v1540_v23 }
 0x1c8   : > { %v1543_v29 = vpop.f32.mrf.mxu1 }
 0x1c9   : > { %2081 = vst [vmem:[%s3446_s22 + $0xa8] sm:$0xff] %v2459_v26  ;;  %v1849_v31 = vadd.f32 %v3440_v12, %v1542_v27  ;;  %v1544_v32 = vadd.f32 %v1543_v29, %v1350_v28  ;;  %v1352_v33 = vpop.f32.mrf.mxu0 }
 0x1ca   : > { %v1545_v34 = vpop.f32.mrf.mxu1 }
 0x1cb   : > { %v2460_v35 = vpack.c.bf16 %v1849_v31, %v1848_v30  ;;  %v1546_v36 = vadd.f32 %v1545_v34, %v1352_v33  ;;  %v1356_v37 = vpop.f32.mrf.mxu0  ;;  %v1850_v39 = vadd.f32 %v3438_v11, %v1544_v32 }
 0x1cc   : > { %v1549_v38 = vpop.f32.mrf.mxu1 }
 0x1cd   : > { %2082 = vst [vmem:[%s3446_s22 + $0xb0] sm:$0xff] %v2460_v35  ;;  %v1851_v40 = vadd.f32 %v3440_v12, %v1546_v36  ;;  %v1550_v41 = vadd.f32 %v1549_v38, %v1356_v37  ;;  %v1358_v42 = vpop.f32.mrf.mxu0 }
 0x1ce   : > { %v1551_v43 = vpop.f32.mrf.mxu1 }
 0x1cf   : > { %v2461_v44 = vpack.c.bf16 %v1851_v40, %v1850_v39  ;;  %v1552_v45 = vadd.f32 %v1551_v43, %v1358_v42  ;;  %v1360_v46 = vpop.f32.mrf.mxu0  ;;  %v1852_v48 = vadd.f32 %v3438_v11, %v1550_v41 }
 0x1d0   : > { %v1553_v47 = vpop.f32.mrf.mxu1 }
 0x1d1   : > { %2083 = vst [vmem:[%s3446_s22 + $0xb8] sm:$0xff] %v2461_v44  ;;  %v1853_v49 = vadd.f32 %v3440_v12, %v1552_v45  ;;  %v1554_v50 = vadd.f32 %v1553_v47, %v1360_v46  ;;  %v1362_v51 = vpop.f32.mrf.mxu0 }
 0x1d2   : > { %v1555_v52 = vpop.f32.mrf.mxu1 }
 0x1d3   : > { %v2462_v53 = vpack.c.bf16 %v1853_v49, %v1852_v48  ;;  %v1556_v54 = vadd.f32 %v1555_v52, %v1362_v51  ;;  %v1366_v55 = vpop.f32.mrf.mxu0  ;;  %v1854_v57 = vadd.f32 %v3438_v11, %v1554_v50 }
 0x1d4   : > { %v1559_v56 = vpop.f32.mrf.mxu1 }
 0x1d5   : > { %2084 = vst [vmem:[%s3446_s22 + $0xc0] sm:$0xff] %v2462_v53  ;;  %v1855_v58 = vadd.f32 %v3440_v12, %v1556_v54  ;;  %v1560_v59 = vadd.f32 %v1559_v56, %v1366_v55  ;;  %v1368_v60 = vpop.f32.mrf.mxu0 }
 0x1d6   : > { %v1561_v61 = vpop.f32.mrf.mxu1 }
 0x1d7   : > { %v2463_v62 = vpack.c.bf16 %v1855_v58, %v1854_v57  ;;  %v1562_v63 = vadd.f32 %v1561_v61, %v1368_v60  ;;  %v1370_v0 = vpop.f32.mrf.mxu0  ;;  %v1856_v2 = vadd.f32 %v3438_v11, %v1560_v59 }
 0x1d8   : > { %v1563_v1 = vpop.f32.mrf.mxu1 }
 0x1d9   : > { %2085 = vst [vmem:[%s3446_s22 + $0xc8] sm:$0xff] %v2463_v62  ;;  %v1857_v3 = vadd.f32 %v3440_v12, %v1562_v63  ;;  %v1564_v4 = vadd.f32 %v1563_v1, %v1370_v0  ;;  %v1372_v5 = vpop.f32.mrf.mxu0 }
 0x1da   : > { %v1565_v6 = vpop.f32.mrf.mxu1 }
 0x1db   : > { %v2464_v7 = vpack.c.bf16 %v1857_v3, %v1856_v2  ;;  %v1566_v8 = vadd.f32 %v1565_v6, %v1372_v5  ;;  %v1376_v9 = vpop.f32.mrf.mxu0  ;;  %v1858_v13 = vadd.f32 %v3438_v11, %v1564_v4 }
 0x1dc   : > { %v1569_v10 = vpop.f32.mrf.mxu1 }
 0x1dd   : > { %2086 = vst [vmem:[%s3446_s22 + $0xd0] sm:$0xff] %v2464_v7  ;;  %v1859_v14 = vadd.f32 %v3440_v12, %v1566_v8  ;;  %v1570_v15 = vadd.f32 %v1569_v10, %v1376_v9  ;;  %v1378_v16 = vpop.f32.mrf.mxu0 }
 0x1de   : > { %v1571_v17 = vpop.f32.mrf.mxu1 }
 0x1df   : > { %v2465_v18 = vpack.c.bf16 %v1859_v14, %v1858_v13  ;;  %v1572_v19 = vadd.f32 %v1571_v17, %v1378_v16  ;;  %v1380_v20 = vpop.f32.mrf.mxu0  ;;  %v1860_v22 = vadd.f32 %v3438_v11, %v1570_v15 }
 0x1e0   : > { %v1573_v21 = vpop.f32.mrf.mxu1 }
 0x1e1   : > { %2087 = vst [vmem:[%s3446_s22 + $0xd8] sm:$0xff] %v2465_v18  ;;  %v1861_v23 = vadd.f32 %v3440_v12, %v1572_v19  ;;  %v1574_v24 = vadd.f32 %v1573_v21, %v1380_v20  ;;  %v1382_v25 = vpop.f32.mrf.mxu0 }
 0x1e2   : > { %v1575_v26 = vpop.f32.mrf.mxu1 }
 0x1e3   : > { %v2466_v27 = vpack.c.bf16 %v1861_v23, %v1860_v22  ;;  %v1576_v28 = vadd.f32 %v1575_v26, %v1382_v25  ;;  %v1386_v29 = vpop.f32.mrf.mxu0  ;;  %v1862_v31 = vadd.f32 %v3438_v11, %v1574_v24 }
 0x1e4   : > { %v1579_v30 = vpop.f32.mrf.mxu1 }
 0x1e5   : > { %2088 = vst [vmem:[%s3446_s22 + $0xe0] sm:$0xff] %v2466_v27  ;;  %v1863_v32 = vadd.f32 %v3440_v12, %v1576_v28  ;;  %v1580_v33 = vadd.f32 %v1579_v30, %v1386_v29  ;;  %v1388_v34 = vpop.f32.mrf.mxu0 }
 0x1e6   : > { %v1581_v35 = vpop.f32.mrf.mxu1 }
 0x1e7   : > { %v2467_v36 = vpack.c.bf16 %v1863_v32, %v1862_v31  ;;  %v1582_v37 = vadd.f32 %v1581_v35, %v1388_v34  ;;  %v1390_v38 = vpop.f32.mrf.mxu0  ;;  %v1864_v40 = vadd.f32 %v3438_v11, %v1580_v33 }
 0x1e8   : > { %v1583_v39 = vpop.f32.mrf.mxu1 }
 0x1e9   : > { %2089 = vst [vmem:[%s3446_s22 + $0xe8] sm:$0xff] %v2467_v36  ;;  %v1865_v41 = vadd.f32 %v3440_v12, %v1582_v37  ;;  %v1584_v42 = vadd.f32 %v1583_v39, %v1390_v38  ;;  %v1392_v43 = vpop.f32.mrf.mxu0 }
 0x1ea   : > { %v1585_v44 = vpop.f32.mrf.mxu1 }
 0x1eb   : > { %v2468_v45 = vpack.c.bf16 %v1865_v41, %v1864_v40  ;;  %v1586_v46 = vadd.f32 %v1585_v44, %v1392_v43  ;;  %v1866_v47 = vadd.f32 %v3438_v11, %v1584_v42 }
 0x1ed   : > { %2090 = vst [vmem:[%s3446_s22 + $0xf0] sm:$0xff] %v2468_v45  ;;  %v1867_v48 = vadd.f32 %v3440_v12, %v1586_v46 }
 0x1ef   : > { %v2469_v49 = vpack.c.bf16 %v1867_v48, %v1866_v47 }
 0x1f1   : > { %2091 = vst [vmem:[%s3446_s22 + $0xf8] sm:$0xff] %v2469_v49 }
 0x1f2   : > { %2904 = shalt.err (!%p2901_p5)
}
 0x1f3   : > { %s2905_s9 = scalar_lea.hbm %s3547_s3, 4096  ;;  %s2909_s27 = scalar_lea.hbm %s3674_s0, 32768 }
 0x1f4   : > { %p2906_p7 = scmp.ne.s32.totalorder %s3547_s3, %s2905_s9  ;;  %p2910_p0 = scmp.lt.s32.totalorder %s3547_s3, %s3674_s0 }
 0x1f5   : > { %p2911_p13 = scmp.lt.s32.totalorder %s2909_s27, %s2905_s9 }
 0x1f6   : > { %p2907_p11 = pnand %p2906_p7, %p3249_p3 }
 0x1f7   : > { %p2912_p4 = por %p2911_p13, %p2910_p0 }
 0x1f8   : > { %p2908_p12 = pneg %p2907_p11 }
 0x1fa   : > { %p2913_p6 = pnand %p2912_p4, %p2908_p12 }
 0x1fc   : > { %2916 = shalt.err (!%p2913_p6)
}
 0x1fd   : > { %s3050_s22 = smov 128   ;;  %s3051_s10 = smov 512  }
 0x1fe   : > { %s3052_s7 = smov 8  }
 0x1ff   : > { %2477 = dma.vmem_to_hbm [thread:$0]  (%p3249_p3), %s3549_s21, 4096, %s3547_s3, %s3554_s14, %s3050_s22, %s3051_s10, %s3052_s7  }
 0x200 PF: > { %s3675_s18 = sld [smem:[#allocation24_spill]]  ;;  %p2494_p10 = scmp.ge.s32.totalorder %s3039_s25, 2 }
 0x201   : > { %s2124_s30 = sand.u32 1, %s2987_s12  }
 0x202   : > { %s2125_s5 = scalar_lea.sflag [#allocation5], %s2124_s30 }
 0x206   : > { %p3676_p1 = scmp.ne.s32.totalorder %s3675_s18, 0 }
 0x208   : > { %p2490_p9 = pnand %p2494_p10, %p3676_p1 }
 0x20a   : > { %p2491_p2 = pneg %p2490_p9 }
 0x20c   : > { %2982 = dma.done.wait (%p2491_p2), %s2125_s5, 4096  }
 0x20d   : > { %2984 = vsyncadd (%p2491_p2), %s2125_s5, 4294963200  ;;  %s22_s25 = sadd.s32 1, %s3039_s25   ;;  %s3678_s6 = sld [smem:[#allocation13_spill]] }
 0x20e   : > { %p3582_p8 = scmp.ge.s32.totalorder %s22_s25, 10   ;;  %s3679_s14 = sld [smem:[#allocation23_spill]] }
 0x20f   : > { %s3680_s21 = sld [smem:[#allocation14_spill]]  ;;  %s3687_s12 = smov %s2991_s13 }
 0x210   : > { %s3681_s17 = sld [smem:[#allocation21_spill]]  ;;  %s3689_s15 = smov %s3003_s16 }
 0x211   : > { %s3682_s24 = sld [smem:[#allocation15_spill]]  ;;  %s3691_s18 = smov %s3015_s19 }
 0x212   : > { %s3683_s20 = sld [smem:[#allocation22_spill]] }
 0x213   : > { %s3684_s22 = sld [smem:[#allocation18_spill]]  ;;  %s3688_s13 = smov %s3678_s6 }
 0x214   : > { %s3685_s26 = sld [smem:[#allocation19_spill]] }
 0x215   : > { %s3686_s3 = sld [smem:[#allocation20_spill]]  ;;  %s3690_s16 = smov %s3680_s21 }
 0x216   : > { %s3693_s21 = smov %s3031_s23 }
 0x217   : > { %s3692_s19 = smov %s3682_s24  ;;  %21 = sbr.rel (!%p3582_p8) target bundleno = 16 (0x10), region = 109 }
 0x21a   : > { %s3694_s23 = smov %s3685_s26 }
 0x21b   : > { %s3695_s24 = smov %s3686_s3 }
 0x21c   :  { %2130 = vsyncpa [#allocation4], 1 }
 0x21d   :  { %2132 = vsyncpa [#allocation4 + $0x1], 1 }
 0x21e   :  { %2133 = vsyncpa [#allocation7], 1 }
 0x21f   :  { %2135 = vsyncpa [#allocation7 + $0x1], 1 }
 0x220   :  { %2136 = vsyncpa [#allocation5], 1 }
 0x221   :  { %2138 = vsyncpa [#allocation5 + $0x1], 1 }

</bundles_post_ra>
